<compile_context>
chip_gen: v7x
topology: tpu7x:2x2x1
jax: 0.10.0
libtpu: 0.0.40
codegen_flags: <defaults>
</compile_context>

<pallas_src>
from functools import partial

import jax
import jax.numpy as jnp
import numpy as np
from jax.experimental import pallas as pl
from jax.experimental.pallas import tpu as pltpu

# ----------------------------- configuration --------------------------------
BATCH = 2
SEQ_LENGTH = 8          # L
NUM_NODES = 8           # N
INPUT_DIM = 3           # C
EMBED_SIZE = 32         # E  (== frequency_size, number_frequency = 1)
HIDDEN_SIZE = 32
PRE_LENGTH = 4
OUTPUT_DIM = 1
SPARSITY_THRESHOLD = 0.01

M_PTS = NUM_NODES * SEQ_LENGTH           # 64 rfft points
N_FREQ = M_PTS // 2 + 1                  # 33
N_FREQ_PAD = ((N_FREQ + 7) // 8) * 8     # 40 (sublane-padded per batch)
HALF = BATCH * N_FREQ_PAD                # 80 spectral rows (all batches)
CPAD = 8                                 # tokenEmb contraction dim, padded
E2 = 2 * EMBED_SIZE                      # 64 packed [re | im] lanes
FC1_OUT = 64
OUT_PAD = 128                            # lane-dense output width

# row offsets inside the merged 64-lane weight slab `wcat`
R_WTL = 0                                # [Wtok | 0]            (8 rows)
R_WTR = R_WTL + CPAD                     # [0 | Wtok]            (8 rows)
R_W1 = R_WTR + CPAD                      # fourierGC layer 1     (64 rows)
R_W2 = R_W1 + E2                         # fourierGC layer 2     (64 rows)
R_W3 = R_W2 + E2                         # fourierGC layer 3     (64 rows)
R_WC = R_W3 + E2                         # emb10-folded fc1      (L*E rows)
R_W2H = R_WC + SEQ_LENGTH * EMBED_SIZE   # fc2 padded to 64x64   (64 rows)
WCAT_ROWS = R_W2H + FC1_OUT              # 528

# row indices inside the bias/vector slab `vecs` (width 128)
V_BB1, V_BB2, V_BB3, V_FB1, V_FB2, V_FB3 = range(6)
VECS_ROWS = 6

VMEM_SPEC = pl.BlockSpec(memory_space=pltpu.MemorySpace.VMEM)


# ------------------------------- fused kernel --------------------------------
def _fgn_kernel(x_ref, frfi_ref, wcat_ref, irii_ref, w3_ref, vecs_ref, o_ref,
                *, lam, e, half, num_l, rpl):
    """Whole FGN forward on VMEM-resident blocks (no grid)."""
    mm = lambda a, b: jnp.dot(a, b, preferred_element_type=jnp.float32)
    lrelu = lambda v: jnp.where(v >= 0.0, v, 0.01 * v)          # torch default
    shrink = lambda v: jnp.where(v > lam, v - lam,
                                 jnp.where(v < -lam, v + lam, 0.0))
    wrow = lambda r, n: wcat_ref[r:r + n, :]                    # [n, 64]
    vrow = lambda r, n: vecs_ref[r:r + 1, 0:n]                  # [1, n]

    # rfft(dim=1, norm='ortho') of the raw (padded) inputs, one fused matmul
    # against the stacked [FR; FI] block-diagonal DFT matrix.
    tri = mm(frfi_ref[...], x_ref[...])                         # [160, 8]

    # tokenEmb (Linear C->E, no bias) folded with the real|imag lane packing:
    #   z0 = (FR@X) @ [Wtok|0] + (FI@X) @ [0|Wtok]   -> [80, 64] = [re | im]
    z0 = (mm(tri[0:half, :], wrow(R_WTL, CPAD))
          + mm(tri[half:2 * half, :], wrow(R_WTR, CPAD)))

    # fourierGC: diagonal complex scale == one [2E,2E] real matmul per layer
    # on the packed array; ReLU, softshrink, pre-shrink residual chaining and
    # the outer (+ rfft output) residual exactly as in the reference.
    o1 = jnp.maximum(mm(z0, wrow(R_W1, 2 * e)) + vrow(V_BB1, 2 * e), 0.0)
    y = shrink(o1)
    o2 = jnp.maximum(mm(o1, wrow(R_W2, 2 * e)) + vrow(V_BB2, 2 * e), 0.0)
    x2 = shrink(o2) + y
    o3 = jnp.maximum(mm(o2, wrow(R_W3, 2 * e)) + vrow(V_BB3, 2 * e), 0.0)
    z = shrink(o3) + x2 + z0

    # irfft(n=N*L, dim=1, norm='ortho') as one fused matmul [IR | II]@[zr; zi].
    # Padded frequency rows never leak: their iDFT columns are zero.
    zst = jnp.concatenate([z[:, 0:e], z[:, e:2 * e]], axis=0)   # [160, 32]
    yp = mm(irii_ref[...], zst)                                 # [128, 32], rows (l,b,n)

    # Head.  embeddings_10 already folded into fc1 (wc block of wcat):
    # independent per-l partial matmuls, tree-reduced (no serial chain).
    parts = [mm(yp[l * rpl:(l + 1) * rpl, :], wrow(R_WC + l * e, e))
             for l in range(num_l)]
    while len(parts) > 1:
        nxt = [parts[i] + parts[i + 1] for i in range(0, len(parts) - 1, 2)]
        if len(parts) % 2:
            nxt.append(parts[-1])
        parts = nxt
    h = lrelu(parts[0] + vrow(V_FB1, 2 * e))                    # [16, 64]
    h = lrelu(mm(h, wrow(R_W2H, 2 * e)) + vrow(V_FB2, 2 * e))   # [16, 64] (cols>=32 are 0)
    o_ref[...] = mm(h, w3_ref[...]) + vecs_ref[V_FB3:V_FB3 + 1, :]   # [16, 128]


# --------------------- DFT / iDFT constants (init time) ----------------------
def _dft_consts(B, N, L):
    """rfft / irfft (norm='ortho') over the flattened node*time axis as dense
    real matrices (numpy, built once).

    frfi : [2*B*Fp, B*M]  stacked [FR; FI]; columns ordered for x rows in
           (b, l, n) order (absorbs the reference's permute(0,2,1,3)).
    irii : [B*M, 2*B*Fp]  [IR | II]; output rows in (l, b, n) order so the
           head consumes contiguous per-l row blocks.
    """
    M = N * L
    F = M // 2 + 1
    Fp = ((F + 7) // 8) * 8
    s = 1.0 / np.sqrt(M)
    k = np.arange(F, dtype=np.float64)

    # x rows (within a batch) are (l, n); the transform position is j = n*L + l.
    j_of_col = (np.arange(N)[None, :] * L
                + np.arange(L)[:, None]).reshape(-1)            # [M], col = l*N+n
    ang_f = 2.0 * np.pi * np.outer(k, j_of_col) / M             # [F, M]
    fr = np.zeros((Fp, M)); fr[:F] = np.cos(ang_f) * s
    fi = np.zeros((Fp, M)); fi[:F] = -np.sin(ang_f) * s
    frfi = np.concatenate(
        [np.kron(np.eye(B), fr), np.kron(np.eye(B), fi)], axis=0)

    # one-sided irfft weights: 2 on interior bins, 1 on DC / Nyquist
    w = np.full((F,), 2.0)
    w[0] = 1.0
    if M % 2 == 0:
        w[F - 1] = 1.0
    ir_big = np.zeros((B * M, B * Fp))
    ii_big = np.zeros((B * M, B * Fp))
    for l in range(L):
        for b in range(B):
            for n in range(N):
                r = l * (B * N) + b * N + n                     # (l, b, n) row order
                ang = 2.0 * np.pi * k * (n * L + l) / M
                ir_big[r, b * Fp:b * Fp + F] = w * np.cos(ang) * s
                ii_big[r, b * Fp:b * Fp + F] = w * (-np.sin(ang)) * s
    irii = np.concatenate([ir_big, ii_big], axis=1)
    return (jnp.asarray(frfi, jnp.float32), jnp.asarray(irii, jnp.float32))


# -------------------- one-time parameter folding (init) ----------------------
def fold_params(p):
    """Fold the PyTorch-layout parameters into the kernel's 6 operands.
    Runs ONCE, eagerly, outside the jitted forward (per perf feedback)."""
    E, L = EMBED_SIZE, SEQ_LENGTH
    f32 = jnp.float32

    # tokenEmb weight, padded to 8 contraction rows and placed into the two
    # lane-packing matrices [Wtok | 0] and [0 | Wtok].
    wtok_pad = jnp.pad(p['tokenemb_w'].astype(f32),
                       ((0, CPAD - INPUT_DIM), (0, 0)))          # [8, E]
    z8 = jnp.zeros((CPAD, E), f32)
    wtokL = jnp.concatenate([wtok_pad, z8], axis=1)              # [8, 2E]
    wtokR = jnp.concatenate([z8, wtok_pad], axis=1)

    # einsum('bli,ii->bli', x, w) == diagonal complex scale; as a real matmul
    # on the packed [re|im] array it is [[diag(d0), diag(d1)],[-diag(d1), diag(d0)]].
    def cplx_diag(w):
        d = jnp.diagonal(w, axis1=1, axis2=2)                    # [2, E]
        top = jnp.concatenate([jnp.diag(d[0]), jnp.diag(d[1])], axis=1)
        bot = jnp.concatenate([jnp.diag(-d[1]), jnp.diag(d[0])], axis=1)
        return jnp.concatenate([top, bot], axis=0).astype(f32)   # [2E, 2E]

    W1, W2, W3 = cplx_diag(p['w1']), cplx_diag(p['w2']), cplx_diag(p['w3'])

    # embeddings_10 folded into fc layer 1:
    #   wc[(l,e), o] = sum_j emb10[l, j] * fc_w1[e*8 + j, o]
    n_j = p['emb10'].shape[1]
    wc = jnp.einsum('lj,ejo->leo', p['emb10'],
                    p['fc_w1'].reshape(E, n_j, FC1_OUT))
    wc = wc.reshape(L * E, FC1_OUT).astype(f32)                  # [256, 64]

    w2h = jnp.pad(p['fc_w2'].astype(f32),
                  ((0, 0), (0, E2 - HIDDEN_SIZE)))               # [64, 64]
    wcat = jnp.concatenate([wtokL, wtokR, W1, W2, W3, wc, w2h], axis=0)
    assert wcat.shape == (WCAT_ROWS, E2)

    # fc3 padded to a lane-dense 128-wide output (and to the padded h width).
    w3h = jnp.pad(p['fc_w3'].astype(f32),
                  ((0, E2 - HIDDEN_SIZE),
                   (0, OUT_PAD - PRE_LENGTH * OUTPUT_DIM)))      # [64, 128]

    vecs = jnp.zeros((VECS_ROWS, OUT_PAD), f32)
    vecs = vecs.at[V_BB1, :E2].set(jnp.concatenate([p['b1'][0], p['b1'][1]]))
    vecs = vecs.at[V_BB2, :E2].set(jnp.concatenate([p['b2'][0], p['b2'][1]]))
    vecs = vecs.at[V_BB3, :E2].set(jnp.concatenate([p['b3'][0], p['b3'][1]]))
    vecs = vecs.at[V_FB1, :FC1_OUT].set(p['fc_b1'])
    vecs = vecs.at[V_FB2, :HIDDEN_SIZE].set(p['fc_b2'])
    vecs = vecs.at[V_FB3, :PRE_LENGTH * OUTPUT_DIM].set(p['fc_b3'])

    frfi, irii = _dft_consts(BATCH, NUM_NODES, SEQ_LENGTH)
    return dict(frfi=frfi, irii=irii, wcat=wcat, w3h=w3h, vecs=vecs)


# ------------------------------ forward pass ---------------------------------
def fgn_forward(consts, pre_train_embedding):
    # pre_train_embedding: [B, L, N, C]  (reference permutes (0,2,1,3); that
    # permute is absorbed into the DFT matrix columns, so only a free reshape
    # + a tiny channel pad remain on the data path).
    B, L, N, C = pre_train_embedding.shape
    x = pre_train_embedding.reshape(B * L * N, C).astype(jnp.float32)
    x = jnp.pad(x, ((0, 0), (0, CPAD - C)))                      # [128, 8]

    kern = partial(_fgn_kernel, lam=SPARSITY_THRESHOLD, e=EMBED_SIZE,
                   half=B * N_FREQ_PAD, num_l=L, rpl=B * N)
    out = pl.pallas_call(
        kern,
        out_shape=jax.ShapeDtypeStruct((B * N, OUT_PAD), jnp.float32),
        in_specs=[VMEM_SPEC] * 6,
        out_specs=VMEM_SPEC,
    )(x, consts['frfi'], consts['wcat'], consts['irii'], consts['w3h'],
      consts['vecs'])

    # [B*N, 128] -> [B, pre, N, out]  (matches the reference final permute)
    out = out[:, :PRE_LENGTH * OUTPUT_DIM]
    return out.reshape(B, N, PRE_LENGTH, OUTPUT_DIM).transpose(0, 2, 1, 3)


# ------------------------------- parameters ----------------------------------
def init_params(key):
    ks = jax.random.split(key, 14)
    scale = 0.02
    E = EMBED_SIZE
    p = {}
    # fourierGC parameters (same shapes as the PyTorch module).
    p['w1'] = scale * jax.random.normal(ks[0], (2, E, E), jnp.float32)
    p['b1'] = scale * jax.random.normal(ks[1], (2, E), jnp.float32)
    p['w2'] = scale * jax.random.normal(ks[2], (2, E, E), jnp.float32)
    p['b2'] = scale * jax.random.normal(ks[3], (2, E), jnp.float32)
    p['w3'] = scale * jax.random.normal(ks[4], (2, E, E), jnp.float32)
    p['b3'] = scale * jax.random.normal(ks[5], (2, E), jnp.float32)
    # embeddings_10: [seq_length, 8]
    p['emb10'] = jax.random.normal(ks[6], (SEQ_LENGTH, 8), jnp.float32)
    # tokenEmb: Linear(input_dim, embed_size, bias=False), stored [in, out].
    p['tokenemb_w'] = (jax.random.normal(ks[7], (INPUT_DIM, E), jnp.float32)
                       / np.sqrt(float(INPUT_DIM)))
    # fc head: [E*8 -> 64 -> hidden -> pre_length*output_dim], stored [in, out].
    p['fc_w1'] = (jax.random.normal(ks[8], (E * 8, FC1_OUT), jnp.float32)
                  / np.sqrt(E * 8.0))
    p['fc_b1'] = 0.01 * jax.random.normal(ks[9], (FC1_OUT,), jnp.float32)
    p['fc_w2'] = (jax.random.normal(ks[10], (FC1_OUT, HIDDEN_SIZE), jnp.float32)
                  / np.sqrt(float(FC1_OUT)))
    p['fc_b2'] = 0.01 * jax.random.normal(ks[11], (HIDDEN_SIZE,), jnp.float32)
    p['fc_w3'] = (jax.random.normal(ks[12], (HIDDEN_SIZE,
                                             PRE_LENGTH * OUTPUT_DIM),
                                    jnp.float32)
                  / np.sqrt(float(HIDDEN_SIZE)))
    p['fc_b3'] = 0.01 * jax.random.normal(ks[13],
                                          (PRE_LENGTH * OUTPUT_DIM,),
                                          jnp.float32)
    return p


# --------------------------------- main ---------------------------------------
if __name__ == "__main__":
    key = jax.random.PRNGKey(0)
    pkey, xkey = jax.random.split(key)

    params = init_params(pkey)
    consts = fold_params(params)          # one-time fold, outside the jit

    # pre_train_embedding: [B, L, N, C]
    pre_train_embedding = jax.random.normal(
        xkey, (BATCH, SEQ_LENGTH, NUM_NODES, INPUT_DIM), jnp.float32)

    out = jax.jit(fgn_forward)(consts, pre_train_embedding)
    out = jax.block_until_ready(out)

    assert out.shape == (BATCH, PRE_LENGTH, NUM_NODES, OUTPUT_DIM), out.shape
    assert out.dtype == jnp.float32
    assert bool(jnp.all(jnp.isfinite(out)))
    print("KERNEL_OK")
</pallas_src>

<mosaic_0001>
module attributes {stable_mosaic.version = 11 : i64} {
  func.func @_fgn_kernel(%arg0: memref<128x8xf32, #tpu.memory_space<vmem>>, %arg1: memref<160x128xf32, #tpu.memory_space<vmem>>, %arg2: memref<528x64xf32, #tpu.memory_space<vmem>>, %arg3: memref<128x160xf32, #tpu.memory_space<vmem>>, %arg4: memref<64x128xf32, #tpu.memory_space<vmem>>, %arg5: memref<6x128xf32, #tpu.memory_space<vmem>>, %arg6: memref<16x128xf32, #tpu.memory_space<vmem>>) attributes {dimension_semantics = [], scalar_prefetch = 0 : i64, scratch_operands = 0 : i64, tpu.core_type = #tpu.core_type<tc>} {
    %c0 = arith.constant 0 : index
    %c0_0 = arith.constant 0 : index
    %0 = vector.load %arg1[%c0, %c0_0] : memref<160x128xf32, #tpu.memory_space<vmem>>, vector<160x128xf32>
    %c0_1 = arith.constant 0 : index
    %c0_2 = arith.constant 0 : index
    %1 = vector.load %arg0[%c0_1, %c0_2] : memref<128x8xf32, #tpu.memory_space<vmem>>, vector<128x8xf32>
    %cst = arith.constant dense<0.000000e+00> : vector<160x8xf32>
    %2 = tpu.matmul %0, %1, %cst {dimension_numbers = #tpu.dot_dimension_numbers<[1], [0], [0], [1], [0, 0, 1, 1], [], []>} : vector<160x128xf32>, vector<128x8xf32>, vector<160x8xf32> -> vector<160x8xf32>
    %3 = vector.extract_strided_slice %2 {offsets = [0, 0], sizes = [80, 8], strides = [1, 1]} : vector<160x8xf32> to vector<80x8xf32>
    %c0_3 = arith.constant 0 : index
    %c0_4 = arith.constant 0 : index
    %4 = vector.load %arg2[%c0_3, %c0_4] : memref<528x64xf32, #tpu.memory_space<vmem>>, vector<8x64xf32>
    %cst_5 = arith.constant dense<0.000000e+00> : vector<80x64xf32>
    %5 = tpu.matmul %3, %4, %cst_5 {dimension_numbers = #tpu.dot_dimension_numbers<[1], [0], [0], [1], [0, 0, 1, 1], [], []>} : vector<80x8xf32>, vector<8x64xf32>, vector<80x64xf32> -> vector<80x64xf32>
    %6 = vector.extract_strided_slice %2 {offsets = [80, 0], sizes = [80, 8], strides = [1, 1]} : vector<160x8xf32> to vector<80x8xf32>
    %c8 = arith.constant 8 : index
    %c0_6 = arith.constant 0 : index
    %7 = vector.load %arg2[%c8, %c0_6] : memref<528x64xf32, #tpu.memory_space<vmem>>, vector<8x64xf32>
    %cst_7 = arith.constant dense<0.000000e+00> : vector<80x64xf32>
    %8 = tpu.matmul %6, %7, %cst_7 {dimension_numbers = #tpu.dot_dimension_numbers<[1], [0], [0], [1], [0, 0, 1, 1], [], []>} : vector<80x8xf32>, vector<8x64xf32>, vector<80x64xf32> -> vector<80x64xf32>
    %9 = arith.addf %5, %8 : vector<80x64xf32>
    %c16 = arith.constant 16 : index
    %c0_8 = arith.constant 0 : index
    %10 = vector.load %arg2[%c16, %c0_8] : memref<528x64xf32, #tpu.memory_space<vmem>>, vector<64x64xf32>
    %cst_9 = arith.constant dense<0.000000e+00> : vector<80x64xf32>
    %11 = tpu.matmul %9, %10, %cst_9 {dimension_numbers = #tpu.dot_dimension_numbers<[1], [0], [0], [1], [0, 0, 1, 1], [], []>} : vector<80x64xf32>, vector<64x64xf32>, vector<80x64xf32> -> vector<80x64xf32>
    %c0_10 = arith.constant 0 : index
    %c0_11 = arith.constant 0 : index
    %12 = vector.load %arg5[%c0_10, %c0_11] : memref<6x128xf32, #tpu.memory_space<vmem>>, vector<1x64xf32>
    %13 = vector.broadcast %12 : vector<1x64xf32> to vector<80x64xf32>
    %14 = arith.addf %11, %13 : vector<80x64xf32>
    %cst_12 = arith.constant 0.000000e+00 : f32
    %15 = vector.broadcast %cst_12 : f32 to vector<80x64xf32>
    %16 = arith.maximumf %14, %15 : vector<80x64xf32>
    %cst_13 = arith.constant 0.00999999977 : f32
    %17 = vector.broadcast %cst_13 : f32 to vector<80x64xf32>
    %18 = arith.cmpf ogt, %16, %17 : vector<80x64xf32>
    %cst_14 = arith.constant 0.00999999977 : f32
    %19 = vector.broadcast %cst_14 : f32 to vector<80x64xf32>
    %20 = arith.subf %16, %19 : vector<80x64xf32>
    %cst_15 = arith.constant -0.00999999977 : f32
    %21 = vector.broadcast %cst_15 : f32 to vector<80x64xf32>
    %22 = arith.cmpf olt, %16, %21 : vector<80x64xf32>
    %cst_16 = arith.constant 0.00999999977 : f32
    %23 = vector.broadcast %cst_16 : f32 to vector<80x64xf32>
    %24 = arith.addf %16, %23 : vector<80x64xf32>
    %cst_17 = arith.constant 0.000000e+00 : f32
    %25 = vector.broadcast %cst_17 : f32 to vector<80x64xf32>
    %26 = arith.select %22, %24, %25 : vector<80x64xi1>, vector<80x64xf32>
    %27 = arith.select %18, %20, %26 : vector<80x64xi1>, vector<80x64xf32>
    %c80 = arith.constant 80 : index
    %c0_18 = arith.constant 0 : index
    %28 = vector.load %arg2[%c80, %c0_18] : memref<528x64xf32, #tpu.memory_space<vmem>>, vector<64x64xf32>
    %cst_19 = arith.constant dense<0.000000e+00> : vector<80x64xf32>
    %29 = tpu.matmul %16, %28, %cst_19 {dimension_numbers = #tpu.dot_dimension_numbers<[1], [0], [0], [1], [0, 0, 1, 1], [], []>} : vector<80x64xf32>, vector<64x64xf32>, vector<80x64xf32> -> vector<80x64xf32>
    %c1 = arith.constant 1 : index
    %c0_20 = arith.constant 0 : index
    %30 = vector.load %arg5[%c1, %c0_20] : memref<6x128xf32, #tpu.memory_space<vmem>>, vector<1x64xf32>
    %31 = vector.broadcast %30 : vector<1x64xf32> to vector<80x64xf32>
    %32 = arith.addf %29, %31 : vector<80x64xf32>
    %cst_21 = arith.constant 0.000000e+00 : f32
    %33 = vector.broadcast %cst_21 : f32 to vector<80x64xf32>
    %34 = arith.maximumf %32, %33 : vector<80x64xf32>
    %cst_22 = arith.constant 0.00999999977 : f32
    %35 = vector.broadcast %cst_22 : f32 to vector<80x64xf32>
    %36 = arith.cmpf ogt, %34, %35 : vector<80x64xf32>
    %cst_23 = arith.constant 0.00999999977 : f32
    %37 = vector.broadcast %cst_23 : f32 to vector<80x64xf32>
    %38 = arith.subf %34, %37 : vector<80x64xf32>
    %cst_24 = arith.constant -0.00999999977 : f32
    %39 = vector.broadcast %cst_24 : f32 to vector<80x64xf32>
    %40 = arith.cmpf olt, %34, %39 : vector<80x64xf32>
    %cst_25 = arith.constant 0.00999999977 : f32
    %41 = vector.broadcast %cst_25 : f32 to vector<80x64xf32>
    %42 = arith.addf %34, %41 : vector<80x64xf32>
    %cst_26 = arith.constant 0.000000e+00 : f32
    %43 = vector.broadcast %cst_26 : f32 to vector<80x64xf32>
    %44 = arith.select %40, %42, %43 : vector<80x64xi1>, vector<80x64xf32>
    %45 = arith.select %36, %38, %44 : vector<80x64xi1>, vector<80x64xf32>
    %46 = arith.addf %45, %27 : vector<80x64xf32>
    %c144 = arith.constant 144 : index
    %c0_27 = arith.constant 0 : index
    %47 = vector.load %arg2[%c144, %c0_27] : memref<528x64xf32, #tpu.memory_space<vmem>>, vector<64x64xf32>
    %cst_28 = arith.constant dense<0.000000e+00> : vector<80x64xf32>
    %48 = tpu.matmul %34, %47, %cst_28 {dimension_numbers = #tpu.dot_dimension_numbers<[1], [0], [0], [1], [0, 0, 1, 1], [], []>} : vector<80x64xf32>, vector<64x64xf32>, vector<80x64xf32> -> vector<80x64xf32>
    %c2 = arith.constant 2 : index
    %c0_29 = arith.constant 0 : index
    %49 = vector.load %arg5[%c2, %c0_29] : memref<6x128xf32, #tpu.memory_space<vmem>>, vector<1x64xf32>
    %50 = vector.broadcast %49 : vector<1x64xf32> to vector<80x64xf32>
    %51 = arith.addf %48, %50 : vector<80x64xf32>
    %cst_30 = arith.constant 0.000000e+00 : f32
    %52 = vector.broadcast %cst_30 : f32 to vector<80x64xf32>
    %53 = arith.maximumf %51, %52 : vector<80x64xf32>
    %cst_31 = arith.constant 0.00999999977 : f32
    %54 = vector.broadcast %cst_31 : f32 to vector<80x64xf32>
    %55 = arith.cmpf ogt, %53, %54 : vector<80x64xf32>
    %cst_32 = arith.constant 0.00999999977 : f32
    %56 = vector.broadcast %cst_32 : f32 to vector<80x64xf32>
    %57 = arith.subf %53, %56 : vector<80x64xf32>
    %cst_33 = arith.constant -0.00999999977 : f32
    %58 = vector.broadcast %cst_33 : f32 to vector<80x64xf32>
    %59 = arith.cmpf olt, %53, %58 : vector<80x64xf32>
    %cst_34 = arith.constant 0.00999999977 : f32
    %60 = vector.broadcast %cst_34 : f32 to vector<80x64xf32>
    %61 = arith.addf %53, %60 : vector<80x64xf32>
    %cst_35 = arith.constant 0.000000e+00 : f32
    %62 = vector.broadcast %cst_35 : f32 to vector<80x64xf32>
    %63 = arith.select %59, %61, %62 : vector<80x64xi1>, vector<80x64xf32>
    %64 = arith.select %55, %57, %63 : vector<80x64xi1>, vector<80x64xf32>
    %65 = arith.addf %64, %46 : vector<80x64xf32>
    %66 = arith.addf %65, %9 : vector<80x64xf32>
    %67 = vector.extract_strided_slice %66 {offsets = [0, 0], sizes = [80, 32], strides = [1, 1]} : vector<80x64xf32> to vector<80x32xf32>
    %68 = vector.extract_strided_slice %66 {offsets = [0, 32], sizes = [80, 32], strides = [1, 1]} : vector<80x64xf32> to vector<80x32xf32>
    %69 = tpu.concatenate %67, %68 in 0 : vector<80x32xf32>, vector<80x32xf32> -> vector<160x32xf32>
    %c0_36 = arith.constant 0 : index
    %c0_37 = arith.constant 0 : index
    %70 = vector.load %arg3[%c0_36, %c0_37] : memref<128x160xf32, #tpu.memory_space<vmem>>, vector<128x160xf32>
    %cst_38 = arith.constant dense<0.000000e+00> : vector<128x32xf32>
    %71 = tpu.matmul %70, %69, %cst_38 {dimension_numbers = #tpu.dot_dimension_numbers<[1], [0], [0], [1], [0, 0, 1, 1], [], []>} : vector<128x160xf32>, vector<160x32xf32>, vector<128x32xf32> -> vector<128x32xf32>
    %72 = vector.extract_strided_slice %71 {offsets = [0, 0], sizes = [16, 32], strides = [1, 1]} : vector<128x32xf32> to vector<16x32xf32>
    %c208 = arith.constant 208 : index
    %c0_39 = arith.constant 0 : index
    %73 = vector.load %arg2[%c208, %c0_39] : memref<528x64xf32, #tpu.memory_space<vmem>>, vector<32x64xf32>
    %cst_40 = arith.constant dense<0.000000e+00> : vector<16x64xf32>
    %74 = tpu.matmul %72, %73, %cst_40 {dimension_numbers = #tpu.dot_dimension_numbers<[1], [0], [0], [1], [0, 0, 1, 1], [], []>} : vector<16x32xf32>, vector<32x64xf32>, vector<16x64xf32> -> vector<16x64xf32>
    %75 = vector.extract_strided_slice %71 {offsets = [16, 0], sizes = [16, 32], strides = [1, 1]} : vector<128x32xf32> to vector<16x32xf32>
    %c240 = arith.constant 240 : index
    %c0_41 = arith.constant 0 : index
    %76 = vector.load %arg2[%c240, %c0_41] : memref<528x64xf32, #tpu.memory_space<vmem>>, vector<32x64xf32>
    %cst_42 = arith.constant dense<0.000000e+00> : vector<16x64xf32>
    %77 = tpu.matmul %75, %76, %cst_42 {dimension_numbers = #tpu.dot_dimension_numbers<[1], [0], [0], [1], [0, 0, 1, 1], [], []>} : vector<16x32xf32>, vector<32x64xf32>, vector<16x64xf32> -> vector<16x64xf32>
    %78 = vector.extract_strided_slice %71 {offsets = [32, 0], sizes = [16, 32], strides = [1, 1]} : vector<128x32xf32> to vector<16x32xf32>
    %c272 = arith.constant 272 : index
    %c0_43 = arith.constant 0 : index
    %79 = vector.load %arg2[%c272, %c0_43] : memref<528x64xf32, #tpu.memory_space<vmem>>, vector<32x64xf32>
    %cst_44 = arith.constant dense<0.000000e+00> : vector<16x64xf32>
    %80 = tpu.matmul %78, %79, %cst_44 {dimension_numbers = #tpu.dot_dimension_numbers<[1], [0], [0], [1], [0, 0, 1, 1], [], []>} : vector<16x32xf32>, vector<32x64xf32>, vector<16x64xf32> -> vector<16x64xf32>
    %81 = vector.extract_strided_slice %71 {offsets = [48, 0], sizes = [16, 32], strides = [1, 1]} : vector<128x32xf32> to vector<16x32xf32>
    %c304 = arith.constant 304 : index
    %c0_45 = arith.constant 0 : index
    %82 = vector.load %arg2[%c304, %c0_45] : memref<528x64xf32, #tpu.memory_space<vmem>>, vector<32x64xf32>
    %cst_46 = arith.constant dense<0.000000e+00> : vector<16x64xf32>
    %83 = tpu.matmul %81, %82, %cst_46 {dimension_numbers = #tpu.dot_dimension_numbers<[1], [0], [0], [1], [0, 0, 1, 1], [], []>} : vector<16x32xf32>, vector<32x64xf32>, vector<16x64xf32> -> vector<16x64xf32>
    %84 = vector.extract_strided_slice %71 {offsets = [64, 0], sizes = [16, 32], strides = [1, 1]} : vector<128x32xf32> to vector<16x32xf32>
    %c336 = arith.constant 336 : index
    %c0_47 = arith.constant 0 : index
    %85 = vector.load %arg2[%c336, %c0_47] : memref<528x64xf32, #tpu.memory_space<vmem>>, vector<32x64xf32>
    %cst_48 = arith.constant dense<0.000000e+00> : vector<16x64xf32>
    %86 = tpu.matmul %84, %85, %cst_48 {dimension_numbers = #tpu.dot_dimension_numbers<[1], [0], [0], [1], [0, 0, 1, 1], [], []>} : vector<16x32xf32>, vector<32x64xf32>, vector<16x64xf32> -> vector<16x64xf32>
    %87 = vector.extract_strided_slice %71 {offsets = [80, 0], sizes = [16, 32], strides = [1, 1]} : vector<128x32xf32> to vector<16x32xf32>
    %c368 = arith.constant 368 : index
    %c0_49 = arith.constant 0 : index
    %88 = vector.load %arg2[%c368, %c0_49] : memref<528x64xf32, #tpu.memory_space<vmem>>, vector<32x64xf32>
    %cst_50 = arith.constant dense<0.000000e+00> : vector<16x64xf32>
    %89 = tpu.matmul %87, %88, %cst_50 {dimension_numbers = #tpu.dot_dimension_numbers<[1], [0], [0], [1], [0, 0, 1, 1], [], []>} : vector<16x32xf32>, vector<32x64xf32>, vector<16x64xf32> -> vector<16x64xf32>
    %90 = vector.extract_strided_slice %71 {offsets = [96, 0], sizes = [16, 32], strides = [1, 1]} : vector<128x32xf32> to vector<16x32xf32>
    %c400 = arith.constant 400 : index
    %c0_51 = arith.constant 0 : index
    %91 = vector.load %arg2[%c400, %c0_51] : memref<528x64xf32, #tpu.memory_space<vmem>>, vector<32x64xf32>
    %cst_52 = arith.constant dense<0.000000e+00> : vector<16x64xf32>
    %92 = tpu.matmul %90, %91, %cst_52 {dimension_numbers = #tpu.dot_dimension_numbers<[1], [0], [0], [1], [0, 0, 1, 1], [], []>} : vector<16x32xf32>, vector<32x64xf32>, vector<16x64xf32> -> vector<16x64xf32>
    %93 = vector.extract_strided_slice %71 {offsets = [112, 0], sizes = [16, 32], strides = [1, 1]} : vector<128x32xf32> to vector<16x32xf32>
    %c432 = arith.constant 432 : index
    %c0_53 = arith.constant 0 : index
    %94 = vector.load %arg2[%c432, %c0_53] : memref<528x64xf32, #tpu.memory_space<vmem>>, vector<32x64xf32>
    %cst_54 = arith.constant dense<0.000000e+00> : vector<16x64xf32>
    %95 = tpu.matmul %93, %94, %cst_54 {dimension_numbers = #tpu.dot_dimension_numbers<[1], [0], [0], [1], [0, 0, 1, 1], [], []>} : vector<16x32xf32>, vector<32x64xf32>, vector<16x64xf32> -> vector<16x64xf32>
    %96 = arith.addf %74, %77 : vector<16x64xf32>
    %97 = arith.addf %80, %83 : vector<16x64xf32>
    %98 = arith.addf %86, %89 : vector<16x64xf32>
    %99 = arith.addf %92, %95 : vector<16x64xf32>
    %100 = arith.addf %96, %97 : vector<16x64xf32>
    %101 = arith.addf %98, %99 : vector<16x64xf32>
    %102 = arith.addf %100, %101 : vector<16x64xf32>
    %c3 = arith.constant 3 : index
    %c0_55 = arith.constant 0 : index
    %103 = vector.load %arg5[%c3, %c0_55] : memref<6x128xf32, #tpu.memory_space<vmem>>, vector<1x64xf32>
    %104 = vector.broadcast %103 : vector<1x64xf32> to vector<16x64xf32>
    %105 = arith.addf %102, %104 : vector<16x64xf32>
    %cst_56 = arith.constant 0.000000e+00 : f32
    %106 = vector.broadcast %cst_56 : f32 to vector<16x64xf32>
    %107 = arith.cmpf oge, %105, %106 : vector<16x64xf32>
    %cst_57 = arith.constant 0.00999999977 : f32
    %108 = vector.broadcast %cst_57 : f32 to vector<16x64xf32>
    %109 = arith.mulf %108, %105 : vector<16x64xf32>
    %110 = arith.select %107, %105, %109 : vector<16x64xi1>, vector<16x64xf32>
    %c464 = arith.constant 464 : index
    %c0_58 = arith.constant 0 : index
    %111 = vector.load %arg2[%c464, %c0_58] : memref<528x64xf32, #tpu.memory_space<vmem>>, vector<64x64xf32>
    %cst_59 = arith.constant dense<0.000000e+00> : vector<16x64xf32>
    %112 = tpu.matmul %110, %111, %cst_59 {dimension_numbers = #tpu.dot_dimension_numbers<[1], [0], [0], [1], [0, 0, 1, 1], [], []>} : vector<16x64xf32>, vector<64x64xf32>, vector<16x64xf32> -> vector<16x64xf32>
    %c4 = arith.constant 4 : index
    %c0_60 = arith.constant 0 : index
    %113 = vector.load %arg5[%c4, %c0_60] : memref<6x128xf32, #tpu.memory_space<vmem>>, vector<1x64xf32>
    %114 = vector.broadcast %113 : vector<1x64xf32> to vector<16x64xf32>
    %115 = arith.addf %112, %114 : vector<16x64xf32>
    %cst_61 = arith.constant 0.000000e+00 : f32
    %116 = vector.broadcast %cst_61 : f32 to vector<16x64xf32>
    %117 = arith.cmpf oge, %115, %116 : vector<16x64xf32>
    %cst_62 = arith.constant 0.00999999977 : f32
    %118 = vector.broadcast %cst_62 : f32 to vector<16x64xf32>
    %119 = arith.mulf %118, %115 : vector<16x64xf32>
    %120 = arith.select %117, %115, %119 : vector<16x64xi1>, vector<16x64xf32>
    %c0_63 = arith.constant 0 : index
    %c0_64 = arith.constant 0 : index
    %121 = vector.load %arg4[%c0_63, %c0_64] : memref<64x128xf32, #tpu.memory_space<vmem>>, vector<64x128xf32>
    %cst_65 = arith.constant dense<0.000000e+00> : vector<16x128xf32>
    %122 = tpu.matmul %120, %121, %cst_65 {dimension_numbers = #tpu.dot_dimension_numbers<[1], [0], [0], [1], [0, 0, 1, 1], [], []>} : vector<16x64xf32>, vector<64x128xf32>, vector<16x128xf32> -> vector<16x128xf32>
    %c5 = arith.constant 5 : index
    %c0_66 = arith.constant 0 : index
    %123 = vector.load %arg5[%c5, %c0_66] : memref<6x128xf32, #tpu.memory_space<vmem>>, vector<1x128xf32>
    %124 = vector.broadcast %123 : vector<1x128xf32> to vector<16x128xf32>
    %125 = arith.addf %122, %124 : vector<16x128xf32>
    %c0_67 = arith.constant 0 : index
    %c0_68 = arith.constant 0 : index
    %126 = vector.load %arg6[%c0_67, %c0_68] : memref<16x128xf32, #tpu.memory_space<vmem>>, vector<16x128xf32>
    tpu.vector_store %arg6[%c0_67, %c0_68], %125 {strides = array<i32>} : memref<16x128xf32, #tpu.memory_space<vmem>>, vector<16x128xf32>,
    return
  }
}

</mosaic_0001>

<bundles_post_ra>
// kernel: fgn_forward.1
= control target key start
LH: loop header
LB: loop body
LE: loop exit
PB: predicated region body
PF: predicated region fallthrough
CT: control target
= control target key end

     0   :  { %vm226_vm0 = vcmask 64512   ;;  %vm530_vm1 = vcmask 523264   ;;  %s3272_s24 = smov 96   ;;  %s4098_s0 = inlined_call_operand.vmem [shape: f32[128,8], index: 0, kind: input, shape index: {}]   ;;  %s4099_s1 = inlined_call_operand.vmem [shape: f32[160,128], index: 1, kind: input, shape index: {}]   ;;  %s4100_s2 = inlined_call_operand.vmem [shape: f32[528,64], index: 2, kind: input, shape index: {}]   ;;  %s4101_s5 = inlined_call_operand.vmem [shape: f32[6,128], index: 5, kind: input, shape index: {}]   ;;  %s4102_s3 = inlined_call_operand.vmem [shape: f32[128,160], index: 3, kind: input, shape index: {}]   ;;  %s4103_s4 = inlined_call_operand.vmem [shape: f32[64,128], index: 4, kind: input, shape index: {}]   ;;  %s4104_s6 = inlined_call_operand.vmem [shape: f32[16,128], index: 6, kind: output, shape index: {}]  }
   0x1   :  { %v43_v0 = vld [vmem:[%s4098_s0] sm:$0xff]  ;;  %v44_v1 = vld [vmem:[%s4098_s0 + $0x8] sm:$0xff]  ;;  %v45_v2 = vld [vmem:[%s4098_s0 + $0x10] sm:$0xff] }
   0x2   :  { %v3014_v3 = vpack.c.bf16 %v44_v1, %v43_v0  ;;  %v46_v4 = vld [vmem:[%s4098_s0 + $0x18] sm:$0xff]  ;;  %v47_v6 = vld [vmem:[%s4098_s0 + $0x20] sm:$0xff]  ;;  %v48_v7 = vld [vmem:[%s4098_s0 + $0x28] sm:$0xff] }
   0x3   :  { %v3018_v5 = vpack.c.bf16 %v46_v4, %v45_v2  ;;  %v3022_v8 = vpack.c.bf16 %v48_v7, %v47_v6  ;;  %v23_v9 = vld [vmem:[%s4099_s1] sm:$0xff]  ;;  %v49_v10 = vld [vmem:[%s4098_s0 + $0x30] sm:$0xff]  ;;  %v50_v11 = vld [vmem:[%s4098_s0 + $0x38] sm:$0xff] }
   0x4   :  { %3015 = vmatprep.subr.bf16.mxu0 %v3014_v3  ;;  %2731 = vmatprep.mubr.f32.mxu0 %v23_v9  ;;  %v3026_v12 = vpack.c.bf16 %v50_v11, %v49_v10  ;;  %v51_v13 = vld [vmem:[%s4098_s0 + $0x40] sm:$0xff]  ;;  %v52_v14 = vld [vmem:[%s4098_s0 + $0x48] sm:$0xff]  ;;  %v53_v16 = vld [vmem:[%s4098_s0 + $0x50] sm:$0xff] }
   0x5   :  { %3017 = vmatpush3.bf16.msra.mxu0 %v3014_v3  ;;  %v3030_v15 = vpack.c.bf16 %v52_v14, %v51_v13  ;;  %v54_v17 = vld [vmem:[%s4098_s0 + $0x58] sm:$0xff]  ;;  %v55_v19 = vld [vmem:[%s4098_s0 + $0x60] sm:$0xff]  ;;  %v56_v20 = vld [vmem:[%s4098_s0 + $0x68] sm:$0xff] }
   0x6   :  { %3019 = vmatprep.subr.bf16.mxu0 %v3018_v5  ;;  %v3034_v18 = vpack.c.bf16 %v54_v17, %v53_v16  ;;  %v3038_v21 = vpack.c.bf16 %v56_v20, %v55_v19  ;;  %v57_v22 = vld [vmem:[%s4098_s0 + $0x70] sm:$0xff]  ;;  %v58_v23 = vld [vmem:[%s4098_s0 + $0x78] sm:$0xff]  ;;  %v24_v25 = vld [vmem:[%s4099_s1 + $0x8] sm:$0xff] }
   0x7   :  { %v3042_v24 = vpack.c.bf16 %v58_v23, %v57_v22  ;;  %v25_v26 = vld [vmem:[%s4099_s1 + $0x10] sm:$0xff]  ;;  %v26_v27 = vld [vmem:[%s4099_s1 + $0x18] sm:$0xff]  ;;  %v27_v28 = vld [vmem:[%s4099_s1 + $0x20] sm:$0xff] }
   0x8   :  { %v28_v29 = vld [vmem:[%s4099_s1 + $0x28] sm:$0xff]  ;;  %v29_v30 = vld [vmem:[%s4099_s1 + $0x30] sm:$0xff]  ;;  %v30_v31 = vld [vmem:[%s4099_s1 + $0x38] sm:$0xff] }
   0x9   :  { %3021 = vmatpush3.bf16.msra.mxu0 %v3018_v5  ;;  %v31_v32 = vld [vmem:[%s4099_s1 + $0x40] sm:$0xff]  ;;  %v32_v33 = vld [vmem:[%s4099_s1 + $0x48] sm:$0xff]  ;;  %v33_v34 = vld [vmem:[%s4099_s1 + $0x50] sm:$0xff] }
   0xa   :  { %3023 = vmatprep.subr.bf16.mxu0 %v3022_v8  ;;  %v34_v35 = vld [vmem:[%s4099_s1 + $0x58] sm:$0xff]  ;;  %v35_v36 = vld [vmem:[%s4099_s1 + $0x60] sm:$0xff]  ;;  %v36_v37 = vld [vmem:[%s4099_s1 + $0x68] sm:$0xff] }
   0xb   :  { %v37_v38 = vld [vmem:[%s4099_s1 + $0x70] sm:$0xff]  ;;  %v38_v39 = vld [vmem:[%s4099_s1 + $0x78] sm:$0xff]  ;;  %v39_v40 = vld [vmem:[%s4099_s1 + $0x80] sm:$0xff] }
   0xc   :  { %v40_v41 = vld [vmem:[%s4099_s1 + $0x88] sm:$0xff]  ;;  %v41_v42 = vld [vmem:[%s4099_s1 + $0x90] sm:$0xff]  ;;  %v42_v43 = vld [vmem:[%s4099_s1 + $0x98] sm:$0xff] }
   0xd   :  { %3025 = vmatpush3.bf16.msra.mxu0 %v3022_v8  ;;  %v225_v44 = vld [vmem:[%s4100_s2 + $0x8] sm:$0xff]  ;;  %v224_v45 = vld [vmem:[%s4100_s2] sm:$0xff]  ;;  %v517_v56 = vld [vmem:[%s4100_s2 + $0x10] sm:$0xff] }
   0xe   :  { %3027 = vmatprep.subr.bf16.mxu0 %v3026_v12  ;;  %2761 = vmatprep.subr.mxu1 %v225_v44  ;;  %v518_v57 = vld [vmem:[%s4100_s2 + $0x18] sm:$0xff]  ;;  %v519_v5 = vld [vmem:[%s4100_s2 + $0x20] sm:$0xff]  ;;  %v520_v6 = vld [vmem:[%s4100_s2 + $0x28] sm:$0xff] }
   0xf   :  { %2762 = vmatpush3.msra.mxu1 %v225_v44  ;;  %v3046_v60 = vpack.c.bf16 %v518_v57, %v517_v56  ;;  %v3050_v7 = vpack.c.bf16 %v520_v6, %v519_v5  ;;  %v521_v8 = vld [vmem:[%s4100_s2 + $0x30] sm:$0xff]  ;;  %v522_v9 = vld [vmem:[%s4100_s2 + $0x38] sm:$0xff]  ;;  %v523_v11 = vld [vmem:[%s4100_s2 + $0x40] sm:$0xff] }
  0x10   :  { %2778 = vmatprep.subr.mxu1 %v224_v45  ;;  %v3054_v10 = vpack.c.bf16 %v522_v9, %v521_v8  ;;  %v746_v14 = vld [vmem:[%s4100_s2 + $0x50] sm:$0xff]  ;;  %v748_v17 = vld [vmem:[%s4100_s2 + $0x60] sm:$0xff]  ;;  %v751_v23 = vld [vmem:[%s4100_s2 + $0x78] sm:$0xff] }
  0x11   :  { %3029 = vmatpush3.bf16.msra.mxu0 %v3026_v12  ;;  %v524_v12 = vld [vmem:[%s4100_s2 + $0x48] sm:$0xff]  ;;  %v750_v22 = vld [vmem:[%s4100_s2 + $0x70] sm:$0xff] }
  0x12   :  { %3031 = vmatprep.subr.bf16.mxu0 %v3030_v15  ;;  %v3058_v13 = vpack.c.bf16 %v524_v12, %v523_v11 }
  0x15   :  { %3033 = vmatpush3.bf16.msra.mxu0 %v3030_v15  ;;  %v747_v15 = vld [vmem:[%s4100_s2 + $0x58] sm:$0xff] }
  0x16   :  { %3035 = vmatprep.subr.bf16.mxu0 %v3034_v18  ;;  %v3062_v16 = vpack.c.bf16 %v747_v15, %v746_v14 }
  0x19   :  { %3037 = vmatpush3.bf16.msra.mxu0 %v3034_v18  ;;  %v749_v18 = vld [vmem:[%s4100_s2 + $0x68] sm:$0xff] }
  0x1a   :  { %3039 = vmatprep.subr.bf16.mxu0 %v3038_v21 }
  0x1d   :  { %3041 = vmatpush3.bf16.msra.mxu0 %v3038_v21  ;;  %v3066_v21 = vpack.c.bf16 %v749_v18, %v748_v17 }
  0x1e   :  { %3043 = vmatprep.subr.bf16.mxu0 %v3042_v24 }
  0x21   :  { %3045 = vmatpush3.bf16.msra.mxu0 %v3042_v24 }
  0x24   :  { %2732 = vmatmul.mubr.f32.vlgmr.msra.gmra.mrb[0].mxu0 %v24_v25 }
  0x25   :  { %2734 = vmatprep.mubr.f32.mxu0 %v25_v26  ;;  %v3070_v26 = vpack.c.bf16 %v751_v23, %v750_v22 }
  0x28   :  { %2735 = vmatmul.mubr.f32.gmra.mrb[2].mxu0 %v26_v27 }
  0x29   :  { %2737 = vmatprep.mubr.f32.mxu0 %v27_v28 }
  0x2c   :  { %2738 = vmatmul.mubr.f32.gmra.mrb[4].mxu0 %v28_v29 }
  0x2d   :  { %2740 = vmatprep.mubr.f32.mxu0 %v29_v30 }
  0x30   :  { %2741 = vmatmul.mubr.f32.gmra.mrb[6].mxu0 %v30_v31 }
  0x31   :  { %2743 = vmatprep.mubr.f32.mxu0 %v31_v32 }
  0x34   :  { %2744 = vmatmul.mubr.f32.gmra.mrb[8].mxu0 %v32_v33  ;;  %v752_v33 = vld [vmem:[%s4100_s2 + $0x80] sm:$0xff] }
  0x35   :  { %2746 = vmatprep.mubr.f32.mxu0 %v33_v34  ;;  %v753_v34 = vld [vmem:[%s4100_s2 + $0x88] sm:$0xff] }
  0x38   :  { %2747 = vmatmul.mubr.f32.gmra.mrb[10].mxu0 %v34_v35  ;;  %v3074_v35 = vpack.c.bf16 %v753_v34, %v752_v33 }
  0x39   :  { %2749 = vmatprep.mubr.f32.mxu0 %v35_v36  ;;  %v984_v36 = vld [vmem:[%s4100_s2 + $0x90] sm:$0xff] }
  0x3c   :  { %2750 = vmatmul.mubr.f32.gmra.mrb[12].mxu0 %v36_v37  ;;  %v985_v37 = vld [vmem:[%s4100_s2 + $0x98] sm:$0xff] }
  0x3d   :  { %2752 = vmatprep.mubr.f32.mxu0 %v37_v38  ;;  %v986_v38 = vld [vmem:[%s4100_s2 + $0xa0] sm:$0xff] }
  0x40   :  { %2753 = vmatmul.mubr.f32.gmra.mrb[14].mxu0 %v38_v39  ;;  %v3078_v39 = vpack.c.bf16 %v985_v37, %v984_v36 }
  0x41   :  { %2755 = vmatprep.mubr.f32.mxu0 %v39_v40  ;;  %v987_v40 = vld [vmem:[%s4100_s2 + $0xa8] sm:$0xff] }
  0x42   :  { %3079 = vmatprep.subr.bf16.mxu0 %v3078_v39 }
  0x43   :  { %3081 = vmatpush3.bf16.msra.mxu0 %v3078_v39 }
  0x44   :  { %2756 = vmatmul.mubr.f32.gmra.mrb[16].mxu0 %v40_v41  ;;  %v3082_v41 = vpack.c.bf16 %v987_v40, %v986_v38 }
  0x45   :  { %2758 = vmatprep.mubr.f32.mxu0 %v41_v42  ;;  %v988_v42 = vld [vmem:[%s4100_s2 + $0xb0] sm:$0xff] }
  0x46   :  { %3083 = vmatprep.subr.bf16.mxu0 %v3082_v41 }
  0x47   :  { %3085 = vmatpush3.bf16.msra.mxu0 %v3082_v41 }
  0x48   :  { %2759 = vmatmul.mubr.f32.gmra.mrb[18].mxu0 %v42_v43  ;;  %v989_v43 = vld [vmem:[%s4100_s2 + $0xb8] sm:$0xff] }
  0x49   :  { %v3086_v44 = vpack.c.bf16 %v989_v43, %v988_v42 }
  0x4b   :  { %3087 = vmatprep.subr.bf16.mxu0 %v3086_v44 }
  0x4c   :  { %3089 = vmatpush3.bf16.msra.mxu0 %v3086_v44 }
  0xf7   :  { %v2733_v46 = vpop.f32.mrb[0].mxu0 }
  0xf8   :  { %v125_v47 = vpop.f32.mrb[1].mxu0 }
  0xfb   :  { %v2736_v48 = vpop.f32.mrb[2].mxu0 }
  0xfc   :  { %v135_v49 = vpop.f32.mrb[3].mxu0 }
  0xff   :  { %v2739_v50 = vpop.f32.mrb[4].mxu0 }
 0x100   :  { %v145_v51 = vpop.f32.mrb[5].mxu0 }
 0x103   :  { %v2742_v52 = vpop.f32.mrb[6].mxu0 }
 0x104   :  { %v155_v53 = vpop.f32.mrb[7].mxu0 }
 0x107   :  { %v2745_v54 = vpop.f32.mrb[8].mxu0 }
 0x108   :  { %v165_v55 = vpop.f32.mrb[9].mxu0 }
 0x10b   :  { %v2748_v58 = vpop.f32.mrb[10].mxu0 }
 0x10c   :  { %v175_v59 = vpop.f32.mrb[11].mxu0 }
 0x10d   :  { %2763 = vmatprep.mubr.msk.f32.mxu1 %vm226_vm0, %v175_v59 }
 0x10e   :  { %2764 = vmatmul.mubr.msk.f32.vlgmr.msra.gmra.mrb[0].mxu1 %vm226_vm0, %v2748_v58 }
 0x10f   :  { %2779 = vmatpush3.msra.mxu1 %v224_v45  ;;  %v2751_v61 = vpop.f32.mrb[12].mxu0  ;;  %v990_v45 = vld [vmem:[%s4100_s2 + $0xc0] sm:$0xff] }
 0x110   :  { %v185_v62 = vpop.f32.mrb[13].mxu0  ;;  %3047 = vmatprep.subr.bf16.mxu1 %v3046_v60 }
 0x111   :  { %2766 = vmatprep.mubr.msk.f32.mxu1 %vm226_vm0, %v185_v62 }
 0x112   :  { %2767 = vmatmul.mubr.msk.f32.gmra.mrb[2].mxu1 %vm226_vm0, %v2751_v61 }
 0x113   :  { %v2754_v63 = vpop.f32.mrb[14].mxu0 }
 0x114   :  { %v195_v0 = vpop.f32.mrb[15].mxu0 }
 0x115   :  { %2769 = vmatprep.mubr.msk.f32.mxu1 %vm226_vm0, %v195_v0 }
 0x116   :  { %2770 = vmatmul.mubr.msk.f32.gmra.mrb[4].mxu1 %vm226_vm0, %v2754_v63 }
 0x117   :  { %v2757_v1 = vpop.f32.mrb[16].mxu0 }
 0x118   :  { %v205_v2 = vpop.f32.mrb[17].mxu0 }
 0x119   :  { %2772 = vmatprep.mubr.msk.f32.mxu1 %vm226_vm0, %v205_v2 }
 0x11a   :  { %2773 = vmatmul.mubr.msk.f32.gmra.mrb[6].mxu1 %vm226_vm0, %v2757_v1 }
 0x11b   :  { %v2760_v3 = vpop.f32.mrb[18].mxu0 }
 0x11c   :  { %v215_v4 = vpop.f32.mrb[19].mxu0 }
 0x11d   :  { %2775 = vmatprep.mubr.msk.f32.mxu1 %vm226_vm0, %v215_v4 }
 0x11e   :  { %2776 = vmatmul.mubr.msk.f32.gmra.mrb[8].mxu1 %vm226_vm0, %v2760_v3 }
 0x11f   :  { %2780 = vmatprep.mubr.msk.f32.mxu1 %vm226_vm0, %v125_v47 }
 0x122   :  { %2781 = vmatmul.mubr.msk.f32.vlgmr.msra.gmra.mrb[0].mxu1 %vm226_vm0, %v2733_v46  ;;  %v991_v46 = vld [vmem:[%s4100_s2 + $0xc8] sm:$0xff] }
 0x123   :  { %2783 = vmatprep.mubr.msk.f32.mxu1 %vm226_vm0, %v135_v49  ;;  %3049 = vmatpush3.bf16.msra.mxu1 %v3046_v60  ;;  %v3090_v47 = vpack.c.bf16 %v991_v46, %v990_v45 }
 0x124   :  { %3051 = vmatprep.subr.bf16.mxu1 %v3050_v7 }
 0x125   :  { %3091 = vmatprep.subr.bf16.mxu0 %v3090_v47 }
 0x126   :  { %2784 = vmatmul.mubr.msk.f32.gmra.mrb[2].mxu1 %vm226_vm0, %v2736_v48  ;;  %3093 = vmatpush3.bf16.msra.mxu0 %v3090_v47  ;;  %v2417_v48 = vld [vmem:[%s4101_s5] ss:$0 sm:$0xff] }
 0x127   :  { %2786 = vmatprep.mubr.msk.f32.mxu1 %vm226_vm0, %v145_v51  ;;  %3053 = vmatpush3.bf16.msra.mxu1 %v3050_v7 }
 0x128   :  { %3055 = vmatprep.subr.bf16.mxu1 %v3054_v10 }
 0x12a   :  { %2787 = vmatmul.mubr.msk.f32.gmra.mrb[4].mxu1 %vm226_vm0, %v2739_v50 }
 0x12b   :  { %2789 = vmatprep.mubr.msk.f32.mxu1 %vm226_vm0, %v155_v53  ;;  %3057 = vmatpush3.bf16.msra.mxu1 %v3054_v10 }
 0x12c   :  { %3059 = vmatprep.subr.bf16.mxu1 %v3058_v13 }
 0x12e   :  { %2790 = vmatmul.mubr.msk.f32.gmra.mrb[6].mxu1 %vm226_vm0, %v2742_v52 }
 0x12f   :  { %2792 = vmatprep.mubr.msk.f32.mxu1 %vm226_vm0, %v165_v55  ;;  %3061 = vmatpush3.bf16.msra.mxu1 %v3058_v13 }
 0x130   :  { %3063 = vmatprep.subr.bf16.mxu1 %v3062_v16 }
 0x132   :  { %2793 = vmatmul.mubr.msk.f32.gmra.mrb[8].mxu1 %vm226_vm0, %v2745_v54 }
 0x1f5   :  { %v3478_v19 = vpop.f32.mrb[0].mxu1 }
 0x1f6   :  { %v3480_v20 = vpop.f32.mrb[1].mxu1 }
 0x1f7   :  { %2811 = vmatprep.mubr.msk.f32.mxu1 %vm530_vm1, %v3480_v20 }
 0x1f8   :  { %2812 = vmatmul.mubr.msk.f32.vlgmr.msra.gmra.mrb[10].mxu1 %vm530_vm1, %v3478_v19 }
 0x1f9   :  { %v3492_v24 = vpop.f32.mrb[2].mxu1  ;;  %3065 = vmatpush3.bf16.msra.mxu1 %v3062_v16 }
 0x1fa   :  { %v3494_v25 = vpop.f32.mrb[3].mxu1  ;;  %3067 = vmatprep.subr.bf16.mxu1 %v3066_v21 }
 0x1fb   :  { %2814 = vmatprep.mubr.msk.f32.mxu1 %vm530_vm1, %v3494_v25 }
 0x1fc   :  { %2815 = vmatmul.mubr.msk.f32.gmra.mrb[12].mxu1 %vm530_vm1, %v3492_v24 }
 0x1fd   :  { %v3500_v27 = vpop.f32.mrb[4].mxu1  ;;  %3069 = vmatpush3.bf16.msra.mxu1 %v3066_v21 }
 0x1fe   :  { %v3502_v28 = vpop.f32.mrb[5].mxu1  ;;  %3071 = vmatprep.subr.bf16.mxu1 %v3070_v26 }
 0x1ff   :  { %2817 = vmatprep.mubr.msk.f32.mxu1 %vm530_vm1, %v3502_v28 }
 0x200   :  { %2818 = vmatmul.mubr.msk.f32.gmra.mrb[14].mxu1 %vm530_vm1, %v3500_v27 }
 0x201   :  { %v3508_v29 = vpop.f32.mrb[6].mxu1  ;;  %3073 = vmatpush3.bf16.msra.mxu1 %v3070_v26 }
 0x202   :  { %v3510_v30 = vpop.f32.mrb[7].mxu1  ;;  %3075 = vmatprep.subr.bf16.mxu1 %v3074_v35 }
 0x203   :  { %2820 = vmatprep.mubr.msk.f32.mxu1 %vm530_vm1, %v3510_v30 }
 0x204   :  { %2821 = vmatmul.mubr.msk.f32.gmra.mrb[16].mxu1 %vm530_vm1, %v3508_v29 }
 0x205   :  { %v3516_v31 = vpop.f32.mrb[8].mxu1  ;;  %3077 = vmatpush3.bf16.msra.mxu1 %v3074_v35  ;;  %v3601_v35 = vld [vmem:[%s4101_s5 + $0x1] ss:$0 sm:$0xff] }
 0x206   :  { %v3518_v32 = vpop.f32.mrb[9].mxu1 }
 0x207   :  { %2823 = vmatprep.mubr.msk.f32.mxu1 %vm530_vm1, %v3518_v32 }
 0x208   :  { %2824 = vmatmul.mubr.msk.f32.gmra.mrb[18].mxu1 %vm530_vm1, %v3516_v31 }
 0x2cb   :  { %v2813_v49 = vpop.f32.mrb[10].mxu1 }
 0x2cc   :  { %v633_v50 = vadd.f32 %v2813_v49, %v2417_v48  ;;  %v627_v51 = vpop.f32.mrb[11].mxu1 }
 0x2cd   :  { %v628_v52 = vadd.f32 %v2417_v48, %v627_v51 }
 0x2ce   :  { %v677_v55 = vmax.f32 %v633_v50, 0.0 }
 0x2cf   :  { %v676_v53 = vmax.f32 %v628_v52, 0.0  ;;  %v2816_v54 = vpop.f32.mrb[12].mxu1 }
 0x2d0   :  { %v643_v56 = vadd.f32 %v2816_v54, %v2417_v48  ;;  %v637_v57 = vpop.f32.mrb[13].mxu1  ;;  %vm687_vm2 = vcmp.gt.f32.partialorder %v677_v55, 0.01  ;;  %v2429_v16 = vadd.f32 -0.01, %v677_v55 }
 0x2d1   :  { %v638_v58 = vadd.f32 %v2417_v48, %v637_v57  ;;  %2842 = vmatprep.mubr.msk.f32.mxu1 %vm530_vm1, %v676_v53  ;;  %v716_v15 = vadd.f32 0.01, %v676_v53  ;;  %vm706_vm3 = vcmp.lt.f32.partialorder %v676_v53, -0.01  ;;  %v717_v17 = vadd.f32 0.01, %v677_v55 }
 0x2d2   :  { %2843 = vmatmul.mubr.msk.f32.vlgmr.msra.gmra.mrb[20].mxu1 %vm530_vm1, %v677_v55  ;;  %v3561_v61 = vmax.f32 %v643_v56, 0.0  ;;  %vm686_vm4 = vcmp.gt.f32.partialorder %v676_v53, 0.01  ;;  %v2428_v18 = vadd.f32 -0.01, %v676_v53 }
 0x2d3   :  { %v3559_v59 = vmax.f32 %v638_v58, 0.0  ;;  %v2819_v60 = vpop.f32.mrb[14].mxu1  ;;  %vm707_vm5 = vcmp.lt.f32.partialorder %v677_v55, -0.01  ;;  %v726_v33 = vsel %vm706_vm3, %v716_v15, 0.0 }
 0x2d4   :  { %v653_v62 = vadd.f32 %v2819_v60, %v2417_v48  ;;  %v647_v63 = vpop.f32.mrb[15].mxu1  ;;  %v2431_v21 = vadd.f32 -0.01, %v3561_v61  ;;  %vm709_vm6 = vcmp.lt.f32.partialorder %v3561_v61, -0.01  ;;  %v727_v34 = vsel %vm707_vm5, %v717_v17, 0.0 }
 0x2d5   :  { %2845 = vmatprep.mubr.msk.f32.mxu1 %vm530_vm1, %v3559_v59  ;;  %v648_v0 = vadd.f32 %v2417_v48, %v647_v63  ;;  %v719_v22 = vadd.f32 0.01, %v3561_v61  ;;  %v2430_v23 = vadd.f32 -0.01, %v3559_v59  ;;  %v718_v26 = vadd.f32 0.01, %v3559_v59 }
 0x2d6   :  { %2846 = vmatmul.mubr.msk.f32.gmra.mrb[22].mxu1 %vm530_vm1, %v3561_v61  ;;  %v3569_v5 = vmax.f32 %v653_v62, 0.0  ;;  %vm708_vm7 = vcmp.lt.f32.partialorder %v3559_v59, -0.01  ;;  %vm688_vm8 = vcmp.gt.f32.partialorder %v3559_v59, 0.01  ;;  %v3609_v38 = vsel %vm686_vm4, %v2428_v18, %v726_v33 }
 0x2d7   :  { %v2822_v1 = vpop.f32.mrb[16].mxu1  ;;  %v3567_v3 = vmax.f32 %v648_v0, 0.0  ;;  %vm689_vm9 = vcmp.gt.f32.partialorder %v3561_v61, 0.01  ;;  %v3615_v41 = vsel %vm687_vm2, %v2429_v16, %v727_v34  ;;  %v728_v42 = vsel %vm708_vm7, %v718_v26, 0.0 }
 0x2d8   :  { %v657_v2 = vpop.f32.mrb[17].mxu1  ;;  %v663_v6 = vadd.f32 %v2822_v1, %v2417_v48  ;;  %v2433_v36 = vadd.f32 -0.01, %v3569_v5  ;;  %vm711_vm10 = vcmp.lt.f32.partialorder %v3569_v5, -0.01  ;;  %v729_v46 = vsel %vm709_vm6, %v719_v22, 0.0 }
 0x2d9   :  { %v658_v4 = vadd.f32 %v2417_v48, %v657_v2  ;;  %2848 = vmatprep.mubr.msk.f32.mxu1 %vm530_vm1, %v3567_v3  ;;  %v2432_v39 = vadd.f32 -0.01, %v3567_v3  ;;  %vm690_vm12 = vcmp.gt.f32.partialorder %v3567_v3, 0.01  ;;  %v720_v43 = vadd.f32 0.01, %v3567_v3 }
 0x2da   :  { %2849 = vmatmul.mubr.msk.f32.gmra.mrb[24].mxu1 %vm530_vm1, %v3569_v5  ;;  %v3579_v9 = vmax.f32 %v663_v6, 0.0  ;;  %vm691_vm13 = vcmp.gt.f32.partialorder %v3569_v5, 0.01  ;;  %vm710_vm14 = vcmp.lt.f32.partialorder %v3567_v3, -0.01  ;;  %v738_v54 = vsel %vm688_vm8, %v2430_v23, %v728_v42 }
 0x2db   :  { %v3571_v7 = vmax.f32 %v658_v4, 0.0  ;;  %v2825_v8 = vpop.f32.mrb[18].mxu1  ;;  %v721_v47 = vadd.f32 0.01, %v3569_v5  ;;  %v739_v58 = vsel %vm689_vm9, %v2431_v21, %v729_v46  ;;  %v730_v60 = vsel %vm710_vm14, %v720_v43, 0.0 }
 0x2dc   :  { %v673_v10 = vadd.f32 %v2825_v8, %v2417_v48  ;;  %v667_v11 = vpop.f32.mrb[19].mxu1  ;;  %v3606_v37 = vadd.f32 -0.01, %v3579_v9  ;;  %vm713_vm11 = vcmp.lt.f32.partialorder %v3579_v9, -0.01  ;;  %v3658_v17 = vsel %vm690_vm12, %v2432_v39, %v730_v60 }
 0x2dd   :  { %2851 = vmatprep.mubr.msk.f32.mxu1 %vm530_vm1, %v3571_v7  ;;  %v668_v12 = vadd.f32 %v2417_v48, %v667_v11  ;;  %v723_v48 = vadd.f32 0.01, %v3579_v9  ;;  %v3627_v49 = vadd.f32 -0.01, %v3571_v7  ;;  %vm712_vm15 = vcmp.lt.f32.partialorder %v3571_v7, -0.01 }
 0x2de   :  { %2852 = vmatmul.mubr.msk.f32.gmra.mrb[26].mxu1 %vm530_vm1, %v3579_v9  ;;  %v3585_v14 = vmax.f32 %v673_v10, 0.0  ;;  %v722_v51 = vadd.f32 0.01, %v3571_v7  ;;  %v731_v59 = vsel %vm711_vm10, %v721_v47, 0.0  ;;  %vm692_vm7 = vcmp.gt.f32.partialorder %v3571_v7, 0.01 }
 0x2df   :  { %v3583_v13 = vmax.f32 %v668_v12, 0.0  ;;  %v733_v12 = vsel %vm713_vm11, %v723_v48, 0.0  ;;  %v3664_v22 = vsel %vm691_vm13, %v2433_v36, %v731_v59  ;;  %vm693_vm10 = vcmp.gt.f32.partialorder %v3579_v9, 0.01 }
 0x2e0   :  { %v3633_v52 = vadd.f32 -0.01, %v3585_v14  ;;  %v3638_v55 = vadd.f32 0.01, %v3585_v14  ;;  %vm715_vm2 = vcmp.lt.f32.partialorder %v3585_v14, -0.01 }
 0x2e1   :  { %2854 = vmatprep.mubr.msk.f32.mxu1 %vm530_vm1, %v3583_v13  ;;  %v3643_v62 = vadd.f32 -0.01, %v3583_v13  ;;  %v732_v8 = vsel %vm712_vm15, %v722_v51, 0.0  ;;  %vm714_vm12 = vcmp.lt.f32.partialorder %v3583_v13, -0.01 }
 0x2e2   :  { %2855 = vmatmul.mubr.msk.f32.gmra.mrb[28].mxu1 %vm530_vm1, %v3585_v14  ;;  %v735_v59 = vsel %vm715_vm2, %v3638_v55, 0.0  ;;  %v743_v55 = vsel %vm693_vm10, %v3606_v37, %v733_v12  ;;  %vm694_vm2 = vcmp.gt.f32.partialorder %v3583_v13, 0.01 }
 0x3a5   :  { %v2844_v40 = vpop.f32.mrb[20].mxu1 }
 0x3a6   :  { %v861_v44 = vadd.f32 %v2844_v40, %v3601_v35  ;;  %v855_v45 = vpop.f32.mrb[21].mxu1 }
 0x3a7   :  { %v856_v50 = vadd.f32 %v3601_v35, %v855_v45  ;;  %v724_v45 = vadd.f32 0.01, %v3583_v13 }
 0x3a8   :  { %v905_v53 = vmax.f32 %v861_v44, 0.0 }
 0x3a9   :  { %v904_v56 = vmax.f32 %v856_v50, 0.0  ;;  %v2847_v57 = vpop.f32.mrb[22].mxu1 }
 0x3aa   :  { %v871_v63 = vadd.f32 %v2847_v57, %v3601_v35  ;;  %v865_v0 = vpop.f32.mrb[23].mxu1  ;;  %vm915_vm0 = vcmp.gt.f32.partialorder %v905_v53, 0.01  ;;  %v2450_v2 = vadd.f32 -0.01, %v905_v53 }
 0x3ab   :  { %v866_v1 = vadd.f32 %v3601_v35, %v865_v0  ;;  %2873 = vmatprep.mubr.msk.f32.mxu0 %vm530_vm1, %v904_v56  ;;  %vm914_vm3 = vcmp.gt.f32.partialorder %v904_v56, 0.01  ;;  %v2449_v61 = vadd.f32 -0.01, %v904_v56  ;;  %vm934_vm4 = vcmp.lt.f32.partialorder %v904_v56, -0.01 }
 0x3ac   :  { %v907_v4 = vmax.f32 %v871_v63, 0.0  ;;  %2874 = vmatmul.mubr.msk.f32.vlgmr.msra.gmra.mrb[20].mxu0 %vm530_vm1, %v905_v53  ;;  %v944_v6 = vadd.f32 0.01, %v904_v56  ;;  %vm935_vm5 = vcmp.lt.f32.partialorder %v905_v53, -0.01 }
 0x3ad   :  { %v906_v10 = vmax.f32 %v866_v1, 0.0  ;;  %v945_v11 = vadd.f32 0.01, %v905_v53  ;;  %v2850_v23 = vpop.f32.mrb[24].mxu1 }
 0x3ae   :  { %v2452_v15 = vadd.f32 -0.01, %v907_v4  ;;  %vm937_vm6 = vcmp.lt.f32.partialorder %v907_v4, -0.01  ;;  %v947_v16 = vadd.f32 0.01, %v907_v4  ;;  %v881_v34 = vadd.f32 %v2850_v23, %v3601_v35 }
 0x3af   :  { %v2451_v18 = vadd.f32 -0.01, %v906_v10  ;;  %vm936_vm8 = vcmp.lt.f32.partialorder %v906_v10, -0.01  ;;  %v946_v21 = vadd.f32 0.01, %v906_v10  ;;  %2876 = vmatprep.mubr.msk.f32.mxu0 %vm530_vm1, %v906_v10 }
 0x3b0   :  { %2877 = vmatmul.mubr.msk.f32.gmra.mrb[22].mxu0 %vm530_vm1, %v907_v4  ;;  %v954_v26 = vsel %vm934_vm4, %v944_v6, 0.0  ;;  %v955_v3 = vsel %vm935_vm5, %v945_v11, 0.0  ;;  %vm916_vm9 = vcmp.gt.f32.partialorder %v906_v10, 0.01  ;;  %v957_v33 = vsel %vm937_vm6, %v947_v16, 0.0  ;;  %v875_v39 = vpop.f32.mrb[25].mxu1 }
 0x3b1   :  { %v964_v40 = vsel %vm914_vm3, %v2449_v61, %v954_v26  ;;  %v965_v5 = vsel %vm915_vm0, %v2450_v2, %v955_v3  ;;  %vm917_vm11 = vcmp.gt.f32.partialorder %v907_v4, 0.01  ;;  %v876_v36 = vadd.f32 %v3601_v35, %v875_v39  ;;  %v2853_v47 = vpop.f32.mrb[26].mxu1 }
 0x3b2   :  { %v3675_v42 = vadd.f32 %v964_v40, %v3609_v38  ;;  %v3678_v43 = vadd.f32 %v965_v5, %v3615_v41  ;;  %v956_v44 = vsel %vm936_vm8, %v946_v21, 0.0  ;;  %v909_v46 = vmax.f32 %v881_v34, 0.0  ;;  %v885_v56 = vpop.f32.mrb[27].mxu1 }
 0x3b3   :  { %v966_v48 = vsel %vm916_vm9, %v2451_v18, %v956_v44  ;;  %v967_v50 = vsel %vm917_vm11, %v2452_v15, %v957_v33  ;;  %v908_v51 = vmax.f32 %v876_v36, 0.0  ;;  %v891_v53 = vadd.f32 %v2853_v47, %v3601_v35 }
 0x3b4   :  { %v3685_v38 = vadd.f32 %v966_v48, %v738_v54  ;;  %v3687_v57 = vadd.f32 %v967_v50, %v739_v58  ;;  %v886_v41 = vadd.f32 %v3601_v35, %v885_v56  ;;  %vm919_vm13 = vcmp.gt.f32.partialorder %v909_v46, 0.01 }
 0x3b5   :  { %v2454_v60 = vadd.f32 -0.01, %v909_v46  ;;  %vm939_vm14 = vcmp.lt.f32.partialorder %v909_v46, -0.01  ;;  %v911_v63 = vmax.f32 %v891_v53, 0.0  ;;  %2879 = vmatprep.mubr.msk.f32.mxu0 %vm530_vm1, %v908_v51  ;;  %v2856_v54 = vpop.f32.mrb[28].mxu1  ;;  %v742_v61 = vsel %vm692_vm7, %v3627_v49, %v732_v8 }
 0x3b6   :  { %vm918_vm15 = vcmp.gt.f32.partialorder %v908_v51, 0.01  ;;  %v2453_v0 = vadd.f32 -0.01, %v908_v51  ;;  %v910_v1 = vmax.f32 %v886_v41, 0.0  ;;  %2880 = vmatmul.mubr.msk.f32.gmra.mrb[24].mxu0 %vm530_vm1, %v909_v46  ;;  %v901_v6 = vadd.f32 %v2856_v54, %v3601_v35  ;;  %v895_v16 = vpop.f32.mrb[29].mxu1 }
 0x3b7   :  { %vm938_vm0 = vcmp.lt.f32.partialorder %v908_v51, -0.01  ;;  %v948_v58 = vadd.f32 0.01, %v908_v51  ;;  %v2456_v2 = vadd.f32 -0.01, %v911_v63  ;;  %v896_v18 = vadd.f32 %v3601_v35, %v895_v16 }
 0x3b8   :  { %vm941_vm3 = vcmp.lt.f32.partialorder %v911_v63, -0.01  ;;  %v951_v4 = vadd.f32 0.01, %v911_v63  ;;  %v2455_v10 = vadd.f32 -0.01, %v910_v1  ;;  %2882 = vmatprep.mubr.msk.f32.mxu0 %vm530_vm1, %v910_v1 }
 0x3b9   :  { %vm940_vm4 = vcmp.lt.f32.partialorder %v910_v1, -0.01  ;;  %v950_v11 = vadd.f32 0.01, %v910_v1  ;;  %v913_v15 = vmax.f32 %v901_v6, 0.0  ;;  %v958_v49 = vsel %vm938_vm0, %v948_v58, 0.0 }
 0x3ba   :  { %v949_v7 = vadd.f32 0.01, %v909_v46  ;;  %v961_v8 = vsel %vm941_vm3, %v951_v4, 0.0  ;;  %2883 = vmatmul.mubr.msk.f32.gmra.mrb[26].mxu0 %vm530_vm1, %v911_v63  ;;  %v968_v21 = vsel %vm918_vm15, %v2453_v0, %v958_v49  ;;  %vm920_vm5 = vcmp.gt.f32.partialorder %v910_v1, 0.01 }
 0x3bb   :  { %vm921_vm6 = vcmp.gt.f32.partialorder %v911_v63, 0.01  ;;  %v2458_v23 = vadd.f32 -0.01, %v913_v15  ;;  %vm943_vm7 = vcmp.lt.f32.partialorder %v913_v15, -0.01  ;;  %v3709_v37 = vadd.f32 %v968_v21, %v3658_v17 }
 0x3bc   :  { %v953_v9 = vadd.f32 0.01, %v913_v15  ;;  %v912_v12 = vmax.f32 %v896_v18, 0.0  ;;  %v959_v26 = vsel %vm939_vm14, %v949_v7, 0.0  ;;  %v960_v3 = vsel %vm940_vm4, %v950_v11, 0.0 }
 0x3bd   :  { %v971_v33 = vsel %vm921_vm6, %v2456_v2, %v961_v8  ;;  %v969_v35 = vsel %vm919_vm13, %v2454_v60, %v959_v26  ;;  %v970_v34 = vsel %vm920_vm5, %v2455_v10, %v960_v3  ;;  %v734_v40 = vsel %vm714_vm12, %v724_v45, 0.0 }
 0x3be   :  { %v3714_v39 = vadd.f32 %v971_v33, %v743_v55  ;;  %v2457_v5 = vadd.f32 -0.01, %v912_v12  ;;  %vm942_vm8 = vcmp.lt.f32.partialorder %v912_v12, -0.01  ;;  %v952_v36 = vadd.f32 0.01, %v912_v12  ;;  %2885 = vmatprep.mubr.msk.f32.mxu0 %vm530_vm1, %v912_v12 }
 0x3bf   :  { %v3720_v17 = vadd.f32 %v969_v35, %v3664_v22  ;;  %2886 = vmatmul.mubr.msk.f32.gmra.mrb[28].mxu0 %vm530_vm1, %v913_v15  ;;  %v3723_v44 = vadd.f32 %v970_v34, %v742_v61  ;;  %vm695_vm9 = vcmp.gt.f32.partialorder %v3585_v14, 0.01  ;;  %vm923_vm10 = vcmp.gt.f32.partialorder %v913_v15, 0.01  ;;  %v3739_v14 = vld [vmem:[%s4101_s5 + $0x2] ss:$0 sm:$0xff] }
 0x3c0   :  { %v963_v46 = vsel %vm943_vm7, %v953_v9, 0.0  ;;  %v745_v47 = vsel %vm695_vm9, %v3633_v52, %v735_v59  ;;  %vm922_vm11 = vcmp.gt.f32.partialorder %v912_v12, 0.01  ;;  %v962_v45 = vsel %vm942_vm8, %v952_v36, 0.0 }
 0x3c1   :  { %v973_v48 = vsel %vm923_vm10, %v2458_v23, %v963_v46  ;;  %v744_v50 = vsel %vm694_vm2, %v3643_v62, %v734_v40  ;;  %v972_v22 = vsel %vm922_vm11, %v2457_v5, %v962_v45  ;;  %v3271_v56 = vmov 0.0|0.0  }
 0x3c2   :  { %v3731_v51 = vadd.f32 %v973_v48, %v745_v47  ;;  %v3733_v53 = vadd.f32 %v972_v22, %v744_v50  ;;  %3094 = vmatprep.subr.bf16.mxu1 %v3271_v56 }
 0x47f   :  { %v2875_v52 = vpop.f32.mrb[20].mxu0 }
 0x480   :  { %v1099_v41 = vadd.f32 %v2875_v52, %v3739_v14  ;;  %v1093_v60 = vpop.f32.mrb[21].mxu0 }
 0x481   :  { %v1094_v13 = vadd.f32 %v3739_v14, %v1093_v60 }
 0x482   :  { %v1143_v62 = vmax.f32 %v1099_v41, 0.0 }
 0x483   :  { %v1142_v63 = vmax.f32 %v1094_v13, 0.0  ;;  %v2878_v0 = vpop.f32.mrb[22].mxu0 }
 0x484   :  { %v2471_v59 = vadd.f32 -0.01, %v1143_v62  ;;  %vm1173_vm12 = vcmp.lt.f32.partialorder %v1143_v62, -0.01  ;;  %v1183_v1 = vadd.f32 0.01, %v1143_v62  ;;  %v1109_v54 = vadd.f32 %v2878_v0, %v3739_v14 }
 0x485   :  { %v2470_v58 = vadd.f32 -0.01, %v1142_v63  ;;  %vm1172_vm13 = vcmp.lt.f32.partialorder %v1142_v63, -0.01  ;;  %v1182_v61 = vadd.f32 0.01, %v1142_v63 }
 0x486   :  { %v1145_v2 = vmax.f32 %v1109_v54, 0.0  ;;  %v1103_v4 = vpop.f32.mrb[23].mxu0  ;;  %vm1152_vm14 = vcmp.gt.f32.partialorder %v1142_v63, 0.01  ;;  %v1193_v11 = vsel %vm1173_vm12, %v1183_v1, 0.0 }
 0x487   :  { %v1104_v6 = vadd.f32 %v3739_v14, %v1103_v4  ;;  %v1192_v10 = vsel %vm1172_vm13, %v1182_v61, 0.0  ;;  %vm1153_vm0 = vcmp.gt.f32.partialorder %v1143_v62, 0.01 }
 0x488   :  { %v2473_v55 = vadd.f32 -0.01, %v1145_v2  ;;  %vm1175_vm15 = vcmp.lt.f32.partialorder %v1145_v2, -0.01  ;;  %v1202_v15 = vsel %vm1152_vm14, %v2470_v58, %v1192_v10  ;;  %v1185_v16 = vadd.f32 0.01, %v1145_v2 }
 0x489   :  { %v1144_v7 = vmax.f32 %v1104_v6, 0.0  ;;  %v1203_v49 = vsel %vm1153_vm0, %v2471_v59, %v1193_v11  ;;  %v1212_v8 = vadd.f32 %v1202_v15, %v3675_v42  ;;  %v2881_v18 = vpop.f32.mrb[24].mxu0  ;;  %vm1155_vm3 = vcmp.gt.f32.partialorder %v1145_v2, 0.01 }
 0x48a   :  { %v1213_v21 = vadd.f32 %v1203_v49, %v3678_v43  ;;  %v1195_v23 = vsel %vm1175_vm15, %v1185_v16, 0.0  ;;  %v1119_v9 = vadd.f32 %v2881_v18, %v3739_v14  ;;  %v1113_v12 = vpop.f32.mrb[25].mxu0 }
 0x48b   :  { %vm1174_vm4 = vcmp.lt.f32.partialorder %v1144_v7, -0.01  ;;  %v1184_v26 = vadd.f32 0.01, %v1144_v7  ;;  %v1114_v3 = vadd.f32 %v3739_v14, %v1113_v12  ;;  %v1222_v33 = vadd.f32 %v1212_v8, %v3480_v20 }
 0x48c   :  { %v2472_v35 = vadd.f32 -0.01, %v1144_v7  ;;  %v1147_v34 = vmax.f32 %v1119_v9, 0.0  ;;  %v1223_v40 = vadd.f32 %v3478_v19, %v1213_v21  ;;  %v1205_v5 = vsel %vm1155_vm3, %v2473_v55, %v1195_v23 }
 0x48d   :  { %v1194_v42 = vsel %vm1174_vm4, %v1184_v26, 0.0  ;;  %v1146_v36 = vmax.f32 %v1114_v3, 0.0  ;;  %v2884_v46 = vpop.f32.mrb[26].mxu0  ;;  %v1215_v43 = vadd.f32 %v1205_v5, %v3687_v57  ;;  %vm1154_vm2 = vcmp.gt.f32.partialorder %v1144_v7, 0.01 }
 0x48e   :  { %v1187_v47 = vadd.f32 0.01, %v1147_v34  ;;  %v1129_v45 = vadd.f32 %v2884_v46, %v3739_v14  ;;  %v3246_v22 = vpack.i.bf16 %v1223_v40, %v1222_v33  ;;  %v1123_v20 = vpop.f32.mrb[27].mxu0  ;;  %v3095_v41 = vpack.c.bf16 %v1223_v40, %v1222_v33 }
 0x48f   :  { %v2474_v48 = vadd.f32 -0.01, %v1146_v36  ;;  %vm1176_vm5 = vcmp.lt.f32.partialorder %v1146_v36, -0.01  ;;  %v1186_v50 = vadd.f32 0.01, %v1146_v36  ;;  %v1204_v60 = vsel %vm1154_vm2, %v2472_v35, %v1194_v42 }
 0x490   :  { %v1149_v52 = vmax.f32 %v1129_v45, 0.0  ;;  %v1225_v19 = vadd.f32 %v3492_v24, %v1215_v43  ;;  %v2475_v13 = vadd.f32 -0.01, %v1147_v34  ;;  %vm1177_vm6 = vcmp.lt.f32.partialorder %v1147_v34, -0.01  ;;  %3247 = vrot.lane.b32.xlu0 %v3246_v22, %s3272_s24  ;;  %3096 = vmatpush1.bf16.msra.mxu1 %v3095_v41 }
 0x491   :  { %v1124_v62 = vadd.f32 %v3739_v14, %v1123_v20  ;;  %v1214_v57 = vadd.f32 %v1204_v60, %v3685_v38  ;;  %vm1156_vm8 = vcmp.gt.f32.partialorder %v1146_v36, 0.01  ;;  %vm1157_vm9 = vcmp.gt.f32.partialorder %v1147_v34, 0.01  ;;  %3097 = vmatprep.subr.bf16.mxu1 %v3271_v56 }
 0x492   :  { %vm1179_vm7 = vcmp.lt.f32.partialorder %v1149_v52, -0.01  ;;  %v1189_v63 = vadd.f32 0.01, %v1149_v52  ;;  %v2887_v59 = vpop.f32.mrb[28].mxu0  ;;  %v1196_v1 = vsel %vm1176_vm5, %v1186_v50, 0.0 }
 0x493   :  { %v1148_v0 = vmax.f32 %v1124_v62, 0.0  ;;  %v1224_v24 = vadd.f32 %v1214_v57, %v3494_v25  ;;  %vm1159_vm10 = vcmp.gt.f32.partialorder %v1149_v52, 0.01  ;;  %v1139_v54 = vadd.f32 %v2887_v59, %v3739_v14  ;;  %v1133_v58 = vpop.f32.mrb[29].mxu0 }
 0x494   :  { %v1197_v61 = vsel %vm1177_vm6, %v1187_v47, 0.0  ;;  %v1206_v38 = vsel %vm1156_vm8, %v2474_v48, %v1196_v1  ;;  %v2477_v2 = vadd.f32 -0.01, %v1149_v52  ;;  %v1199_v4 = vsel %vm1179_vm7, %v1189_v63, 0.0 }
 0x495   :  { %v2476_v6 = vadd.f32 -0.01, %v1148_v0  ;;  %v1134_v10 = vadd.f32 %v3739_v14, %v1133_v58  ;;  %vm1178_vm11 = vcmp.lt.f32.partialorder %v1148_v0, -0.01  ;;  %v1188_v11 = vadd.f32 0.01, %v1148_v0 }
 0x496   :  { %v1151_v55 = vmax.f32 %v1139_v54, 0.0  ;;  %v3251_v15 = vpack.i.bf16 %v1225_v19, %v1224_v24  ;;  %v3098_v16 = vpack.c.bf16 %v1225_v19, %v1224_v24  ;;  %v1207_v7 = vsel %vm1157_vm9, %v2475_v13, %v1197_v61  ;;  %v1272_v58 = vld [vmem:[%s4102_s3] sm:$0xff]  ;;  %v1275_v61 = vld [vmem:[%s4102_s3 + $0x18] sm:$0xff] }
 0x497   :  { %v1150_v25 = vmax.f32 %v1134_v10, 0.0  ;;  %v1216_v49 = vadd.f32 %v1206_v38, %v3709_v37  ;;  %vm1158_vm12 = vcmp.gt.f32.partialorder %v1148_v0, 0.01  ;;  %v1198_v8 = vsel %vm1178_vm11, %v1188_v11, 0.0  ;;  %v1274_v38 = vld [vmem:[%s4102_s3 + $0x10] sm:$0xff]  ;;  %v1281_v10 = vld [vmem:[%s4102_s3 + $0x48] sm:$0xff] }
 0x498   :  { %vm1161_vm13 = vcmp.gt.f32.partialorder %v1151_v55, 0.01  ;;  %3252 = vrot.lane.b32.xlu0 %v3251_v15, %s3272_s24  ;;  %v1217_v18 = vadd.f32 %v1207_v7, %v3720_v17  ;;  %v2479_v21 = vadd.f32 -0.01, %v1151_v55  ;;  %vm1181_vm14 = vcmp.lt.f32.partialorder %v1151_v55, -0.01  ;;  %3099 = vmatpush1.bf16.msra.mxu1 %v3098_v16 }
 0x499   :  { %v1191_v14 = vadd.f32 0.01, %v1151_v55  ;;  %v1226_v23 = vadd.f32 %v1216_v49, %v3502_v28  ;;  %v2478_v9 = vadd.f32 -0.01, %v1150_v25  ;;  %vm1180_vm15 = vcmp.lt.f32.partialorder %v1150_v25, -0.01  ;;  %3100 = vmatprep.subr.bf16.mxu1 %v3271_v56 }
 0x49a   :  { %v1190_v12 = vadd.f32 0.01, %v1150_v25  ;;  %v1227_v37 = vadd.f32 %v3500_v27, %v1217_v18  ;;  %vm1160_vm0 = vcmp.gt.f32.partialorder %v1150_v25, 0.01  ;;  %v1208_v3 = vsel %vm1158_vm12, %v2476_v6, %v1198_v8  ;;  %v1278_v6 = vld [vmem:[%s4102_s3 + $0x30] sm:$0xff]  ;;  %v1280_v11 = vld [vmem:[%s4102_s3 + $0x40] sm:$0xff] }
 0x49b   :  { %v1201_v26 = vsel %vm1181_vm14, %v1191_v14, 0.0  ;;  %v1209_v33 = vsel %vm1159_vm10, %v2477_v2, %v1199_v4  ;;  %v1218_v40 = vadd.f32 %v1208_v3, %v3723_v44  ;;  %vm1304_vm3 = vcmask 261120   ;;  %v1276_v2 = vld [vmem:[%s4102_s3 + $0x20] sm:$0xff]  ;;  %v1279_v4 = vld [vmem:[%s4102_s3 + $0x38] sm:$0xff]  ;;  %v1282_v15 = vld [vmem:[%s4102_s3 + $0x50] sm:$0xff] }
 0x49c   :  { %v1200_v17 = vsel %vm1180_vm15, %v1190_v12, 0.0  ;;  %v3256_v35 = vpack.i.bf16 %v1227_v37, %v1226_v23  ;;  %v3101_v34 = vpack.c.bf16 %v1227_v37, %v1226_v23  ;;  %v1219_v28 = vadd.f32 %v1209_v33, %v3714_v39  ;;  %v1273_v39 = vld [vmem:[%s4102_s3 + $0x8] sm:$0xff]  ;;  %v1283_v55 = vld [vmem:[%s4102_s3 + $0x58] sm:$0xff]  ;;  %v1284_v16 = vld [vmem:[%s4102_s3 + $0x60] sm:$0xff] }
 0x49d   :  { %v1210_v5 = vsel %vm1160_vm0, %v2478_v9, %v1200_v17  ;;  %v1211_v42 = vsel %vm1161_vm13, %v2479_v21, %v1201_v26  ;;  %v1228_v27 = vadd.f32 %v1218_v40, %v3510_v30  ;;  %2480 = vmatprep.mubr.msk.f32.mxu1 %vm1304_vm3, %v1273_v39  ;;  %v1285_v25 = vld [vmem:[%s4102_s3 + $0x68] sm:$0xff]  ;;  %v1287_v7 = vld [vmem:[%s4102_s3 + $0x78] sm:$0xff]  ;;  %v1286_v49 = vld [vmem:[%s4102_s3 + $0x70] sm:$0xff] }
 0x49e   :  { %3257 = vrot.lane.b32.xlu1 %v3256_v35, %s3272_s24  ;;  %3102 = vmatpush1.bf16.msra.mxu1 %v3101_v34  ;;  %v1220_v36 = vadd.f32 %v1210_v5, %v3733_v53  ;;  %v1221_v46 = vadd.f32 %v1211_v42, %v3731_v51  ;;  %v1229_v43 = vadd.f32 %v3508_v29, %v1219_v28  ;;  %v1289_v8 = vld [vmem:[%s4102_s3 + $0x88] sm:$0xff]  ;;  %v1288_v18 = vld [vmem:[%s4102_s3 + $0x80] sm:$0xff]  ;;  %v1291_v21 = vld [vmem:[%s4102_s3 + $0x98] sm:$0xff] }
 0x49f   :  { %3103 = vmatprep.subr.bf16.mxu1 %v3271_v56  ;;  %v1290_v14 = vld [vmem:[%s4102_s3 + $0x90] sm:$0xff]  ;;  %v1293_v23 = vld [vmem:[%s4102_s3 + $0xa8] sm:$0xff]  ;;  %v1292_v9 = vld [vmem:[%s4102_s3 + $0xa0] sm:$0xff] }
 0x4a0   :  { %v1230_v44 = vadd.f32 %v1220_v36, %v3518_v32  ;;  %v1231_v47 = vadd.f32 %v3516_v31, %v1221_v46  ;;  %v3261_v30 = vpack.i.bf16 %v1229_v43, %v1228_v27  ;;  %v3104_v45 = vpack.c.bf16 %v1229_v43, %v1228_v27  ;;  %v1295_v12 = vld [vmem:[%s4102_s3 + $0xb8] sm:$0xff]  ;;  %v1294_v37 = vld [vmem:[%s4102_s3 + $0xb0] sm:$0xff]  ;;  %v1297_v26 = vld [vmem:[%s4102_s3 + $0xc8] sm:$0xff] }
 0x4a1   :  { %v1296_v3 = vld [vmem:[%s4102_s3 + $0xc0] sm:$0xff]  ;;  %v1299_v33 = vld [vmem:[%s4102_s3 + $0xd8] sm:$0xff]  ;;  %v1298_v17 = vld [vmem:[%s4102_s3 + $0xd0] sm:$0xff] }
 0x4a2   :  { %v3266_v53 = vpack.i.bf16 %v1231_v47, %v1230_v44  ;;  %v3107_v48 = vpack.c.bf16 %v1231_v47, %v1230_v44  ;;  %3262 = vrot.lane.b32.xlu1 %v3261_v30, %s3272_s24  ;;  %3105 = vmatpush1.bf16.msra.mxu1 %v3104_v45  ;;  %v1301_v35 = vld [vmem:[%s4102_s3 + $0xe8] sm:$0xff]  ;;  %v1300_v34 = vld [vmem:[%s4102_s3 + $0xe0] sm:$0xff]  ;;  %v1303_v40 = vld [vmem:[%s4102_s3 + $0xf8] sm:$0xff] }
 0x4a3   :  { %3106 = vmatprep.subr.bf16.mxu1 %v3271_v56  ;;  %v1302_v28 = vld [vmem:[%s4102_s3 + $0xf0] sm:$0xff]  ;;  %v1503_v42 = vld [vmem:[%s4100_s2 + $0xf8] sm:$0xff]  ;;  %v1504_v36 = vld [vmem:[%s4100_s2 + $0x100] sm:$0xff] }
 0x4a4   :  { %3267 = vrot.lane.b32.xlu0 %v3266_v53, %s3272_s24  ;;  %v1502_v5 = vld [vmem:[%s4100_s2 + $0xf0] sm:$0xff]  ;;  %v1505_v46 = vld [vmem:[%s4100_s2 + $0x108] sm:$0xff]  ;;  %v1592_v44 = vld [vmem:[%s4100_s2 + $0x138] sm:$0xff] }
 0x4a5   :  { %v3124_v27 = vpack.c.bf16 %v1503_v42, %v1502_v5  ;;  %v3128_v43 = vpack.c.bf16 %v1505_v46, %v1504_v36  ;;  %v1591_v39 = vld [vmem:[%s4100_s2 + $0x130] sm:$0xff]  ;;  %v1589_v42 = vld [vmem:[%s4100_s2 + $0x120] sm:$0xff] }
 0x4a6   :  { %3108 = vmatpush1.bf16.msra.mxu1 %v3107_v48  ;;  %v3132_v47 = vpack.c.bf16 %v1592_v44, %v1591_v39  ;;  %v1676_v46 = vld [vmem:[%s4100_s2 + $0x150] sm:$0xff]  ;;  %v1678_v44 = vld [vmem:[%s4100_s2 + $0x160] sm:$0xff] }
 0x4a7   :  { %3109 = vmatprep.subr.bf16.mxu1 %v3271_v56  ;;  %3125 = vmatprep.subr.bf16.mxu0 %v3124_v27 }
 0x4a8   :  { %3127 = vmatpush3.bf16.msra.mxu0 %v3124_v27  ;;  %v1590_v27 = vld [vmem:[%s4100_s2 + $0x128] sm:$0xff] }
 0x4a9   :  { %3129 = vmatprep.subr.bf16.mxu0 %v3128_v43  ;;  %v3168_v36 = vpack.c.bf16 %v1590_v27, %v1589_v42 }
 0x4ac   :  { %3131 = vmatpush3.bf16.msra.mxu0 %v3128_v43  ;;  %v1677_v43 = vld [vmem:[%s4100_s2 + $0x158] sm:$0xff] }
 0x4ad   :  { %3133 = vmatprep.subr.bf16.mxu0 %v3132_v47  ;;  %v3172_v39 = vpack.c.bf16 %v1677_v43, %v1676_v46 }
 0x502   :  { %v3248_v29 = vpop.permute.xlu0 %3247 }
 0x503   :  { %v3250_v32 = vunpack.i.h.bf16 %v3248_v29  ;;  %v3249_v51 = vunpack.i.l.bf16 %v3248_v29 }
 0x505   :  { %v3110_v31 = vpack.c.bf16 %v3250_v32, %v3249_v51  ;;  %v1593_v32 = vld [vmem:[%s4100_s2 + $0x140] sm:$0xff]  ;;  %v1594_v51 = vld [vmem:[%s4100_s2 + $0x148] sm:$0xff] }
 0x507   :  { %3111 = vmatpush1.bf16.msra.mxu1 %v3110_v31 }
 0x508   :  { %3112 = vmatprep.subr.bf16.mxu1 %v3271_v56 }
 0x50a   :  { %v3253_v50 = vpop.permute.xlu0 %3252 }
 0x50b   :  { %v3255_v22 = vunpack.i.h.bf16 %v3253_v50  ;;  %v3254_v52 = vunpack.i.l.bf16 %v3253_v50  ;;  %v3136_v50 = vpack.c.bf16 %v1594_v51, %v1593_v32  ;;  %v1768_v32 = vld [vmem:[%s4100_s2 + $0x1a8] sm:$0xff] }
 0x50d   :  { %v3113_v20 = vpack.c.bf16 %v3255_v22, %v3254_v52  ;;  %v1680_v52 = vld [vmem:[%s4100_s2 + $0x170] sm:$0xff] }
 0x50f   :  { %3114 = vmatpush1.bf16.msra.mxu1 %v3113_v20  ;;  %v1681_v20 = vld [vmem:[%s4100_s2 + $0x178] sm:$0xff] }
 0x510   :  { %v3258_v41 = vpop.permute.xlu1 %3257  ;;  %3115 = vmatprep.subr.bf16.mxu1 %v3271_v56 }
 0x511   :  { %v3260_v60 = vunpack.i.h.bf16 %v3258_v41  ;;  %v3259_v19 = vunpack.i.l.bf16 %v3258_v41 }
 0x513   :  { %v3116_v13 = vpack.c.bf16 %v3260_v60, %v3259_v19  ;;  %v3140_v60 = vpack.c.bf16 %v1681_v20, %v1680_v52  ;;  %v2199_v52 = vld [vmem:[%s4100_s2 + $0x1e0] sm:$0xff]  ;;  %v2200_v20 = vld [vmem:[%s4100_s2 + $0x1e8] sm:$0xff] }
 0x514   :  { %v3263_v62 = vpop.permute.xlu1 %3262 }
 0x515   :  { %3117 = vmatpush1.bf16.msra.mxu1 %v3116_v13  ;;  %v3265_v57 = vunpack.i.h.bf16 %v3263_v62  ;;  %v3264_v63 = vunpack.i.l.bf16 %v3263_v62 }
 0x516   :  { %v3268_v0 = vpop.permute.xlu0 %3267  ;;  %3118 = vmatprep.subr.bf16.mxu1 %v3271_v56 }
 0x517   :  { %v3270_v59 = vunpack.i.h.bf16 %v3268_v0  ;;  %v3269_v24 = vunpack.i.l.bf16 %v3268_v0  ;;  %v3119_v1 = vpack.c.bf16 %v3265_v57, %v3264_v63  ;;  %v1682_v0 = vld [vmem:[%s4100_s2 + $0x180] sm:$0xff] }
 0x519   :  { %v3122_v54 = vpack.c.bf16 %v3270_v59, %v3269_v24  ;;  %3120 = vmatpush1.bf16.msra.mxu1 %v3119_v1  ;;  %v1683_v59 = vld [vmem:[%s4100_s2 + $0x188] sm:$0xff] }
 0x51a   :  { %3121 = vmatprep.subr.bf16.mxu1 %v3271_v56  ;;  %v1277_v56 = vld [vmem:[%s4102_s3 + $0x28] sm:$0xff]  ;;  %v3144_v1 = vpack.c.bf16 %v1683_v59, %v1682_v0  ;;  %v2297_v0 = vld [vmem:[%s4103_s4] sm:$0xff] }
 0x51b   :  { %v2298_v59 = vld [vmem:[%s4103_s4 + $0x8] sm:$0xff] }
 0x51d   :  { %3123 = vmatpush1.bf16.msra.mxu1 %v3122_v54 }
 0x520   :  { %1418 = vmatmul.mubr.f32.vlgmr.msra.gmra.mrb[30].mxu1 %v1272_v58  ;;  %v1769_v58 = vld [vmem:[%s4100_s2 + $0x1b0] sm:$0xff] }
 0x521   :  { %2481 = vmatprep.mubr.msk.f32.mxu1 %vm1304_vm3, %v1275_v61  ;;  %v1770_v61 = vld [vmem:[%s4100_s2 + $0x1b8] sm:$0xff] }
 0x524   :  { %1423 = vmatmul.mubr.f32.gmra.mrb[32].mxu1 %v1274_v38 }
 0x525   :  { %2482 = vmatprep.mubr.msk.f32.mxu1 %vm1304_vm3, %v1277_v56  ;;  %v3148_v56 = vpack.c.bf16 %v1770_v61, %v1769_v58  ;;  %v2301_v61 = vld [vmem:[%s4103_s4 + $0x20] sm:$0xff] }
 0x528   :  { %1428 = vmatmul.mubr.f32.gmra.mrb[34].mxu1 %v1276_v2 }
 0x529   :  { %2483 = vmatprep.mubr.msk.f32.mxu1 %vm1304_vm3, %v1279_v4 }
 0x52c   :  { %1433 = vmatmul.mubr.f32.gmra.mrb[36].mxu1 %v1278_v6 }
 0x52d   :  { %2484 = vmatprep.mubr.msk.f32.mxu1 %vm1304_vm3, %v1281_v10 }
 0x530   :  { %1438 = vmatmul.mubr.f32.gmra.mrb[38].mxu1 %v1280_v11 }
 0x531   :  { %2485 = vmatprep.mubr.msk.f32.mxu1 %vm1304_vm3, %v1283_v55  ;;  %v1771_v55 = vld [vmem:[%s4100_s2 + $0x1c0] sm:$0xff] }
 0x534   :  { %1443 = vmatmul.mubr.f32.gmra.mrb[40].mxu1 %v1282_v15  ;;  %v1772_v15 = vld [vmem:[%s4100_s2 + $0x1c8] sm:$0xff] }
 0x535   :  { %2486 = vmatprep.mubr.msk.f32.mxu1 %vm1304_vm3, %v1285_v25 }
 0x538   :  { %1448 = vmatmul.mubr.f32.gmra.mrb[42].mxu1 %v1284_v16  ;;  %v3152_v16 = vpack.c.bf16 %v1772_v15, %v1771_v55 }
 0x539   :  { %2487 = vmatprep.mubr.msk.f32.mxu1 %vm1304_vm3, %v1287_v7 }
 0x53c   :  { %1453 = vmatmul.mubr.f32.gmra.mrb[44].mxu1 %v1286_v49  ;;  %v1498_v49 = vld [vmem:[%s4100_s2 + $0xd0] sm:$0xff] }
 0x53d   :  { %2488 = vmatprep.mubr.msk.f32.mxu1 %vm1304_vm3, %v1289_v8  ;;  %v1499_v8 = vld [vmem:[%s4100_s2 + $0xd8] sm:$0xff] }
 0x540   :  { %1458 = vmatmul.mubr.f32.gmra.mrb[46].mxu1 %v1288_v18 }
 0x541   :  { %2489 = vmatprep.mubr.msk.f32.mxu1 %vm1304_vm3, %v1291_v21  ;;  %v3156_v21 = vpack.c.bf16 %v1499_v8, %v1498_v49 }
 0x544   :  { %1463 = vmatmul.mubr.f32.gmra.mrb[48].mxu1 %v1290_v14 }
 0x545   :  { %2490 = vmatprep.mubr.msk.f32.mxu1 %vm1304_vm3, %v1293_v23 }
 0x548   :  { %1468 = vmatmul.mubr.f32.gmra.mrb[50].mxu1 %v1292_v9 }
 0x549   :  { %2491 = vmatprep.mubr.msk.f32.mxu1 %vm1304_vm3, %v1295_v12 }
 0x54c   :  { %1473 = vmatmul.mubr.f32.gmra.mrb[52].mxu1 %v1294_v37 }
 0x54d   :  { %2492 = vmatprep.mubr.msk.f32.mxu1 %vm1304_vm3, %v1297_v26  ;;  %v1500_v26 = vld [vmem:[%s4100_s2 + $0xe0] sm:$0xff] }
 0x550   :  { %1478 = vmatmul.mubr.f32.gmra.mrb[54].mxu1 %v1296_v3  ;;  %v1501_v3 = vld [vmem:[%s4100_s2 + $0xe8] sm:$0xff] }
 0x551   :  { %2493 = vmatprep.mubr.msk.f32.mxu1 %vm1304_vm3, %v1299_v33 }
 0x554   :  { %1483 = vmatmul.mubr.f32.gmra.mrb[56].mxu1 %v1298_v17  ;;  %v3160_v17 = vpack.c.bf16 %v1501_v3, %v1500_v26 }
 0x555   :  { %2494 = vmatprep.mubr.msk.f32.mxu1 %vm1304_vm3, %v1301_v35 }
 0x558   :  { %1488 = vmatmul.mubr.f32.gmra.mrb[58].mxu1 %v1300_v34  ;;  %v1587_v34 = vld [vmem:[%s4100_s2 + $0x110] sm:$0xff] }
 0x559   :  { %2495 = vmatprep.mubr.msk.f32.mxu1 %vm1304_vm3, %v1303_v40  ;;  %v1588_v40 = vld [vmem:[%s4100_s2 + $0x118] sm:$0xff] }
 0x55a   :  { %v3164_v5 = vpack.c.bf16 %v1588_v40, %v1587_v34 }
 0x55c   :  { %1493 = vmatmul.mubr.f32.gmra.mrb[60].mxu1 %v1302_v28 }
 0x5f3   :  { %v3922_v30 = vpop.f32.mrb[30].mxu1 }
 0x5f4   :  { %v1421_v45 = vpop.f32.mrb[31].mxu1 }
 0x5f5   :  { %v1765_v45 = vld [vmem:[%s4100_s2 + $0x190] sm:$0xff] }
 0x5f7   :  { %v3924_v53 = vpop.f32.mrb[32].mxu1 }
 0x5f8   :  { %v1426_v48 = vpop.f32.mrb[33].mxu1 }
 0x5fb   :  { %v1429_v29 = vpop.f32.mrb[34].mxu1 }
 0x5fc   :  { %v1431_v31 = vpop.f32.mrb[35].mxu1  ;;  %2896 = vmatprep.mubr.msk.f32.mxu0 %vm1304_vm3, %v1429_v29  ;;  %v1767_v29 = vld [vmem:[%s4100_s2 + $0x1a0] sm:$0xff] }
 0x5fd   :  { %v3184_v51 = vpack.c.bf16 %v1768_v32, %v1767_v29  ;;  %v2197_v31 = vld [vmem:[%s4100_s2 + $0x1d0] sm:$0xff] }
 0x5ff   :  { %v1434_v22 = vpop.f32.mrb[36].mxu1 }
 0x600   :  { %v1436_v41 = vpop.f32.mrb[37].mxu1  ;;  %2897 = vmatmul.mubr.msk.f32.vlgmr.msra.gmra.mrb[30].mxu0 %vm1304_vm3, %v1434_v22 }
 0x601   :  { %3135 = vmatpush3.bf16.msra.mxu0 %v3132_v47  ;;  %v1679_v47 = vld [vmem:[%s4100_s2 + $0x168] sm:$0xff]  ;;  %v3192_v41 = vpack.c.bf16 %v2200_v20, %v2199_v52 }
 0x602   :  { %3137 = vmatprep.subr.bf16.mxu0 %v3136_v50 }
 0x603   :  { %v3940_v19 = vpop.f32.mrb[38].mxu1 }
 0x604   :  { %v1441_v13 = vpop.f32.mrb[39].mxu1 }
 0x605   :  { %3139 = vmatpush3.bf16.msra.mxu0 %v3136_v50  ;;  %v2198_v50 = vld [vmem:[%s4100_s2 + $0x1d8] sm:$0xff] }
 0x606   :  { %3141 = vmatprep.subr.bf16.mxu0 %v3140_v60  ;;  %v3188_v22 = vpack.c.bf16 %v2198_v50, %v2197_v31 }
 0x607   :  { %v3942_v62 = vpop.f32.mrb[40].mxu1 }
 0x608   :  { %v1446_v57 = vpop.f32.mrb[41].mxu1 }
 0x609   :  { %v2204_v57 = vld [vmem:[%s4100_s2 + $0x208] sm:$0xff] }
 0x60b   :  { %v1449_v63 = vpop.f32.mrb[42].mxu1 }
 0x60c   :  { %v1451_v24 = vpop.f32.mrb[43].mxu1  ;;  %2907 = vmatprep.mubr.msk.f32.mxu0 %vm1304_vm3, %v1449_v63 }
 0x60d   :  { %v2299_v24 = vld [vmem:[%s4103_s4 + $0x10] sm:$0xff] }
 0x60f   :  { %v1454_v54 = vpop.f32.mrb[44].mxu1 }
 0x610   :  { %v1456_v38 = vpop.f32.mrb[45].mxu1  ;;  %2908 = vmatmul.mubr.msk.f32.vlgmr.msra.gmra.mrb[30].mxu0 %vm1304_vm3, %v1454_v54  ;;  %v2300_v54 = vld [vmem:[%s4103_s4 + $0x18] sm:$0xff] }
 0x611   :  { %3143 = vmatpush3.bf16.msra.mxu0 %v3140_v60  ;;  %v2201_v60 = vld [vmem:[%s4100_s2 + $0x1f0] sm:$0xff]  ;;  %v3208_v58 = vpack.c.bf16 %v2300_v54, %v2299_v24  ;;  %v2302_v38 = vld [vmem:[%s4103_s4 + $0x28] sm:$0xff] }
 0x612   :  { %3145 = vmatprep.subr.bf16.mxu0 %v3144_v1 }
 0x613   :  { %v1459_v2 = vpop.f32.mrb[46].mxu1 }
 0x614   :  { %v1461_v4 = vpop.f32.mrb[47].mxu1 }
 0x615   :  { %3147 = vmatpush3.bf16.msra.mxu0 %v3144_v1  ;;  %v3204_v1 = vpack.c.bf16 %v2298_v59, %v2297_v0  ;;  %v2304_v4 = vld [vmem:[%s4103_s4 + $0x38] sm:$0xff] }
 0x616   :  { %3149 = vmatprep.subr.bf16.mxu0 %v3148_v56 }
 0x617   :  { %v3958_v6 = vpop.f32.mrb[48].mxu1  ;;  %3205 = vmatprep.subr.bf16.mxu1 %v3204_v1 }
 0x618   :  { %v1466_v10 = vpop.f32.mrb[49].mxu1  ;;  %3207 = vmatpush3.bf16.msra.mxu1 %v3204_v1 }
 0x619   :  { %3209 = vmatprep.subr.bf16.mxu1 %v3208_v58  ;;  %v2512_v10 = vld [vmem:[%s4101_s5 + $0x3] ss:$0 sm:$0xff] }
 0x61b   :  { %v1469_v11 = vpop.f32.mrb[50].mxu1 }
 0x61c   :  { %v1471_v25 = vpop.f32.mrb[51].mxu1  ;;  %2918 = vmatprep.mubr.msk.f32.mxu0 %vm1304_vm3, %v1469_v11  ;;  %3211 = vmatpush3.bf16.msra.mxu1 %v3208_v58 }
 0x61f   :  { %v1474_v7 = vpop.f32.mrb[52].mxu1 }
 0x620   :  { %v1476_v18 = vpop.f32.mrb[53].mxu1  ;;  %2919 = vmatmul.mubr.msk.f32.vlgmr.msra.gmra.mrb[30].mxu0 %vm1304_vm3, %v1474_v7 }
 0x621   :  { %3151 = vmatpush3.bf16.msra.mxu0 %v3148_v56  ;;  %v3212_v56 = vpack.c.bf16 %v2302_v38, %v2301_v61  ;;  %v2513_v18 = vld [vmem:[%s4101_s5 + $0x4] ss:$0 sm:$0xff] }
 0x622   :  { %3153 = vmatprep.subr.bf16.mxu0 %v3152_v16 }
 0x623   :  { %v1479_v14 = vpop.f32.mrb[54].mxu1  ;;  %3213 = vmatprep.subr.bf16.mxu1 %v3212_v56 }
 0x624   :  { %v1481_v23 = vpop.f32.mrb[55].mxu1  ;;  %3215 = vmatpush3.bf16.msra.mxu1 %v3212_v56 }
 0x625   :  { %3155 = vmatpush3.bf16.msra.mxu0 %v3152_v16 }
 0x626   :  { %3157 = vmatprep.subr.bf16.mxu0 %v3156_v21 }
 0x627   :  { %v1484_v9 = vpop.f32.mrb[56].mxu1 }
 0x628   :  { %v1486_v12 = vpop.f32.mrb[57].mxu1 }
 0x62b   :  { %v1489_v37 = vpop.f32.mrb[58].mxu1 }
 0x62c   :  { %v1491_v33 = vpop.f32.mrb[59].mxu1  ;;  %2929 = vmatprep.mubr.msk.f32.mxu0 %vm1304_vm3, %v1489_v37 }
 0x62d   :  { %v2516_v33 = vld [vmem:[%s4101_s5 + $0x5] ss:$0 sm:$0xff] }
 0x62f   :  { %v1494_v35 = vpop.f32.mrb[60].mxu1 }
 0x630   :  { %v1496_v28 = vpop.f32.mrb[61].mxu1  ;;  %2930 = vmatmul.mubr.msk.f32.vlgmr.msra.gmra.mrb[30].mxu0 %vm1304_vm3, %v1494_v35 }
 0x631   :  { %3159 = vmatpush3.bf16.msra.mxu0 %v3156_v21  ;;  %2940 = vmatprep.mubr.msk.f32.mxu0 %vm1304_vm3, %v3922_v30  ;;  %v3176_v30 = vpack.c.bf16 %v1679_v47, %v1678_v44 }
 0x632   :  { %3161 = vmatprep.subr.bf16.mxu0 %v3160_v17 }
 0x635   :  { %3163 = vmatpush3.bf16.msra.mxu0 %v3160_v17 }
 0x636   :  { %3165 = vmatprep.subr.bf16.mxu0 %v3164_v5 }
 0x638   :  { %2941 = vmatmul.mubr.msk.f32.vlgmr.msra.gmra.mrb[30].mxu0 %vm1304_vm3, %v3924_v53  ;;  %v1766_v53 = vld [vmem:[%s4100_s2 + $0x198] sm:$0xff] }
 0x639   :  { %3167 = vmatpush3.bf16.msra.mxu0 %v3164_v5  ;;  %2951 = vmatprep.mubr.msk.f32.mxu0 %vm1304_vm3, %v3940_v19  ;;  %v3180_v48 = vpack.c.bf16 %v1766_v53, %v1765_v45  ;;  %v2202_v19 = vld [vmem:[%s4100_s2 + $0x1f8] sm:$0xff] }
 0x63a   :  { %3169 = vmatprep.subr.bf16.mxu0 %v3168_v36  ;;  %v3196_v13 = vpack.c.bf16 %v2202_v19, %v2201_v60 }
 0x63d   :  { %3171 = vmatpush3.bf16.msra.mxu0 %v3168_v36 }
 0x63e   :  { %3173 = vmatprep.subr.bf16.mxu0 %v3172_v39 }
 0x640   :  { %2952 = vmatmul.mubr.msk.f32.vlgmr.msra.gmra.mrb[30].mxu0 %vm1304_vm3, %v3942_v62  ;;  %v2203_v62 = vld [vmem:[%s4100_s2 + $0x200] sm:$0xff] }
 0x641   :  { %3175 = vmatpush3.bf16.msra.mxu0 %v3172_v39  ;;  %2962 = vmatprep.mubr.msk.f32.mxu0 %vm1304_vm3, %v1459_v2  ;;  %v3200_v63 = vpack.c.bf16 %v2204_v57, %v2203_v62  ;;  %v2303_v2 = vld [vmem:[%s4103_s4 + $0x30] sm:$0xff] }
 0x642   :  { %3177 = vmatprep.subr.bf16.mxu0 %v3176_v30 }
 0x645   :  { %3179 = vmatpush3.bf16.msra.mxu0 %v3176_v30 }
 0x646   :  { %3181 = vmatprep.subr.bf16.mxu0 %v3180_v48 }
 0x648   :  { %2963 = vmatmul.mubr.msk.f32.vlgmr.msra.gmra.mrb[30].mxu0 %vm1304_vm3, %v3958_v6  ;;  %v3216_v6 = vpack.c.bf16 %v2304_v4, %v2303_v2 }
 0x649   :  { %3183 = vmatpush3.bf16.msra.mxu0 %v3180_v48  ;;  %2973 = vmatprep.mubr.msk.f32.mxu0 %vm1304_vm3, %v1479_v14 }
 0x64a   :  { %3185 = vmatprep.subr.bf16.mxu0 %v3184_v51  ;;  %3217 = vmatprep.subr.bf16.mxu1 %v3216_v6 }
 0x64b   :  { %3219 = vmatpush3.bf16.msra.mxu1 %v3216_v6 }
 0x64d   :  { %3187 = vmatpush3.bf16.msra.mxu0 %v3184_v51 }
 0x64e   :  { %3189 = vmatprep.subr.bf16.mxu0 %v3188_v22 }
 0x650   :  { %2974 = vmatmul.mubr.msk.f32.vlgmr.msra.gmra.mrb[30].mxu0 %vm1304_vm3, %v1484_v9 }
 0x651   :  { %3191 = vmatpush3.bf16.msra.mxu0 %v3188_v22 }
 0x652   :  { %3193 = vmatprep.subr.bf16.mxu0 %v3192_v41 }
 0x655   :  { %3195 = vmatpush3.bf16.msra.mxu0 %v3192_v41 }
 0x656   :  { %3197 = vmatprep.subr.bf16.mxu0 %v3196_v13 }
 0x659   :  { %3199 = vmatpush3.bf16.msra.mxu0 %v3196_v13 }
 0x65a   :  { %3201 = vmatprep.subr.bf16.mxu0 %v3200_v63 }
 0x65d   :  { %3203 = vmatpush3.bf16.msra.mxu0 %v3200_v63 }
 0x723   :  { %v2975_v11 = vpop.f32.mrb[30].mxu0 }
 0x724   :  { %v2190_v55 = vadd.f32 %v2975_v11, %v2512_v10  ;;  %v2169_v15 = vpop.f32.mrb[31].mxu0 }
 0x725   :  { %v2189_v25 = vadd.f32 %v2512_v10, %v2169_v15 }
 0x726   :  { %v2194_v16 = vmul.f32 0.01, %v2190_v55  ;;  %vm2192_vm4 = vcmp.ge.f32.partialorder %v2190_v55, 0.0 }
 0x727   :  { %vm2191_vm2 = vcmp.ge.f32.partialorder %v2189_v25, 0.0  ;;  %v2193_v7 = vmul.f32 0.01, %v2189_v25 }
 0x728   :  { %v2196_v8 = vsel %vm2192_vm4, %v2190_v55, %v2194_v16 }
 0x729   :  { %v2195_v49 = vsel %vm2191_vm2, %v2189_v25, %v2193_v7 }
 0x72a   :  { %2992 = vmatprep.mubr.msk.f32.mxu0 %vm530_vm1, %v2195_v49 }
 0x72b   :  { %2993 = vmatmul.mubr.msk.f32.vlgmr.msra.gmra.mrb[32].mxu0 %vm530_vm1, %v2196_v8 }
 0x7fe   :  { %v2994_v21 = vpop.f32.mrb[32].mxu0 }
 0x7ff   :  { %v2288_v14 = vadd.f32 %v2994_v21, %v2513_v18  ;;  %v2282_v23 = vpop.f32.mrb[33].mxu0 }
 0x800   :  { %v2283_v9 = vadd.f32 %v2513_v18, %v2282_v23 }
 0x801   :  { %v2294_v12 = vmul.f32 0.01, %v2288_v14  ;;  %vm2292_vm5 = vcmp.ge.f32.partialorder %v2288_v14, 0.0 }
 0x802   :  { %vm2291_vm6 = vcmp.ge.f32.partialorder %v2283_v9, 0.0  ;;  %v2293_v37 = vmul.f32 0.01, %v2283_v9 }
 0x803   :  { %v2296_v3 = vsel %vm2292_vm5, %v2288_v14, %v2294_v12 }
 0x804   :  { %v2295_v26 = vsel %vm2291_vm6, %v2283_v9, %v2293_v37 }
 0x805   :  { %3011 = vmatprep.mubr.msk.f32.mxu1 %vm530_vm1, %v2295_v26 }
 0x806   :  { %3012 = vmatmul.mubr.msk.f32.vlgmr.msra.gmra.mrb[62].mxu1 %vm530_vm1, %v2296_v3 }
 0x8d9   :  { %v3013_v17 = vpop.f32.mrb[62].mxu1 }
 0x8da   :  { %v2388_v35 = vadd.f32 %v3013_v17, %v2516_v33  ;;  %v2382_v34 = vpop.f32.mrb[63].mxu1 }
 0x8db   :  { %v2383_v40 = vadd.f32 %v2516_v33, %v2382_v34 }
 0x8dc   :  { %2392 = vst [vmem:[%s4104_s6 + $0x8] sm:$0xff] %v2388_v35 }
 0x8dd   :  { %2391 = vst [vmem:[%s4104_s6] sm:$0xff] %v2383_v40 }

</bundles_post_ra>
